<compile_context>
chip_gen: v7x
topology: tpu7x:2x2x1
jax: 0.10.0
libtpu: 0.0.40
codegen_flags: <defaults>
</compile_context>

<pallas_src>
import numpy as np
import jax
import jax.numpy as jnp
from jax.experimental import pallas as pl
from jax.experimental.pallas import tpu as pltpu

DROPOUT_P = 0.2
_KEEP_SCALE = 1.0 / (1.0 - DROPOUT_P)
# keep element iff uniform u32 >= p * 2^32.  Plain Python int -> jaxpr literal (NOT a
# captured device-array constant, which Pallas rejects).
_DROP_THRESHOLD = int(DROPOUT_P * (2 ** 32))  # 858993459


def _round_up(v, m):
    return ((v + m - 1) // m) * m


def _ae_math(x, we, be, wd, bd, keep):
    """Shared per-tile math: encoder matmul, dropout select, decoder matmul."""
    w_dtype = we.dtype
    h = jnp.dot(x.astype(w_dtype), we, preferred_element_type=jnp.float32) + be
    h = jnp.where(keep, h * _KEEP_SCALE, 0.0)
    out = jnp.dot(h.astype(w_dtype), wd, preferred_element_type=jnp.float32) + bd
    return out, h


def _ae_kernel_prng(seed_ref, x_ref, we_ref, be_ref, wd_ref, bd_ref, out_ref, h_ref):
    """Fast path: dropout mask generated on-chip (no HBM bits stream)."""
    pltpu.prng_seed(seed_ref[0] + pl.program_id(0))          # independent stream per tile
    raw = pltpu.prng_random_bits(h_ref.shape)                # (TB, H)
    bits = raw if raw.dtype == jnp.uint32 else pltpu.bitcast(raw, jnp.uint32)
    keep = bits >= _DROP_THRESHOLD
    out, h = _ae_math(x_ref[...], we_ref[...], be_ref[...], wd_ref[...], bd_ref[...], keep)
    h_ref[...] = h
    out_ref[...] = out


def _ae_kernel_bits(x_ref, we_ref, be_ref, wd_ref, bd_ref, bits_ref, out_ref, h_ref):
    """Fallback path: dropout bits streamed from HBM (portable, interpret-friendly)."""
    keep = bits_ref[...] >= _DROP_THRESHOLD
    out, h = _ae_math(x_ref[...], we_ref[...], be_ref[...], wd_ref[...], bd_ref[...], keep)
    h_ref[...] = h
    out_ref[...] = out


def prepare_params(w_enc, b_enc, w_dec, b_dec):
    """One-time param prep (hoisted out of the per-call path): transpose to row-major
    matmul layout and cast weights to bf16 (halves the dominant HBM weight traffic)."""
    we = jnp.asarray(w_enc.T, dtype=jnp.bfloat16)            # [D_in, H]
    wd = jnp.asarray(w_dec.T, dtype=jnp.bfloat16)            # [H, D_in]
    be = jnp.asarray(b_enc, dtype=jnp.float32).reshape(1, -1)
    bd = jnp.asarray(b_dec, dtype=jnp.float32).reshape(1, -1)
    return we, be, wd, bd


def autoencoder_forward(x, params, dropout_seed, *,
                        use_onchip_prng=True, single_buffer_weights=True):
    """x: [B, D_in] f32; params from prepare_params.
    Returns (reconstruction [B, D_in] f32, hidden-post-dropout [B, H] f32)."""
    we, be, wd, bd = params
    B, D_in = x.shape
    H = we.shape[1]

    # Batch tile: multiple of 8, capped at 512 (fits v5e/v6e/v7x), and sized so the grid
    # has >=2 steps when B allows it (lets the "parallel" axis use both v7x TensorCores).
    TB = min(512, _round_up(max(1, -(-B // 2)), 8))
    B_pad = _round_up(B, TB)
    if B_pad != B:
        x = jnp.pad(x, ((0, B_pad - B), (0, 0)))
    n_tiles = B_pad // TB

    x_spec = pl.BlockSpec((TB, D_in), lambda i: (i, 0))
    out_specs = [
        pl.BlockSpec((TB, D_in), lambda i: (i, 0)),          # reconstruction
        pl.BlockSpec((TB, H), lambda i: (i, 0)),             # hidden (post-dropout)
    ]
    out_shapes = (
        jax.ShapeDtypeStruct((B_pad, D_in), jnp.float32),
        jax.ShapeDtypeStruct((B_pad, H), jnp.float32),
    )

    def resident_spec(shape):
        # Grid-constant block: single-buffer it when supported (halves weight VMEM).
        index_map = lambda i: (0, 0)
        if single_buffer_weights:
            try:
                return pl.BlockSpec(shape, index_map, pipeline_mode=pl.Buffered(1))
            except Exception:
                pass
        return pl.BlockSpec(shape, index_map)

    # --- VMEM budget: double-buffered tiles + weights, capped by the chip's capacity. ---
    weight_bufs = 1 if single_buffer_weights else 2
    bits_tile_bytes = 0 if use_onchip_prng else TB * H * 4
    tile_bytes = TB * D_in * 4 * 2 + TB * H * 4 + bits_tile_bytes   # x + out + h (+ bits)
    weight_bytes = D_in * H * 2 * 2 + (H + D_in) * 4                # bf16 We/Wd + f32 biases
    needed = 2 * tile_bytes + weight_bufs * weight_bytes + (2 << 20)
    try:
        vmem_cap = int(pltpu.get_tpu_info().vmem_capacity_bytes) - (8 << 20)
    except Exception:
        vmem_cap = 48 << 20   # conservative: leaves headroom even on v7x's 64 MiB/TC
    vmem_limit = min(max(int(1.25 * needed), 32 << 20), vmem_cap)

    flops = 2 * 2 * B_pad * D_in * H
    bytes_accessed = (B_pad * D_in * 4 * 2 + B_pad * H * 4
                      + D_in * H * 2 * 2 + (H + D_in) * 4
                      + (0 if use_onchip_prng else B_pad * H * 4))

    if use_onchip_prng:
        seed = jnp.asarray([dropout_seed], dtype=jnp.int32)
        in_specs = [
            pl.BlockSpec(memory_space=pltpu.MemorySpace.SMEM),  # seed scalar
            x_spec,
            resident_spec((D_in, H)),
            resident_spec((1, H)),
            resident_spec((H, D_in)),
            resident_spec((1, D_in)),
        ]
        kernel = _ae_kernel_prng
        inputs = (seed, x, we, be, wd, bd)
    else:
        bits = jax.random.bits(jax.random.PRNGKey(dropout_seed), (B_pad, H),
                               dtype=jnp.uint32)
        in_specs = [
            x_spec,
            resident_spec((D_in, H)),
            resident_spec((1, H)),
            resident_spec((H, D_in)),
            resident_spec((1, D_in)),
            pl.BlockSpec((TB, H), lambda i: (i, 0)),            # dropout bits tile
        ]
        kernel = _ae_kernel_bits
        inputs = (x, we, be, wd, bd, bits)

    grid_spec = pltpu.PrefetchScalarGridSpec(
        num_scalar_prefetch=0,
        grid=(n_tiles,),
        in_specs=in_specs,
        out_specs=out_specs,
    )

    out, h = pl.pallas_call(
        kernel,
        grid_spec=grid_spec,
        out_shape=out_shapes,
        compiler_params=pltpu.CompilerParams(
            dimension_semantics=("parallel",),
            vmem_limit_bytes=vmem_limit,
        ),
        cost_estimate=pl.CostEstimate(
            flops=flops, transcendentals=0, bytes_accessed=bytes_accessed),
    )(*inputs)

    if B_pad != B:
        out = out[:B]
        h = h[:B]
    return out, h


if __name__ == "__main__":
    # Small shapes consistent with the module (original: input_dim=2048, hidden_dim=512).
    B, D_IN, H = 8, 256, 128

    key = jax.random.PRNGKey(0)
    kx, kw1, kb1, kw2, kb2 = jax.random.split(key, 5)

    x = jax.random.normal(kx, (B, D_IN), dtype=jnp.float32)

    # nn.Linear-style init: U(-1/sqrt(fan_in), 1/sqrt(fan_in)).
    bound_e = 1.0 / (D_IN ** 0.5)
    w_enc = jax.random.uniform(kw1, (H, D_IN), jnp.float32, -bound_e, bound_e)
    b_enc = jax.random.uniform(kb1, (H,), jnp.float32, -bound_e, bound_e)
    bound_d = 1.0 / (H ** 0.5)
    w_dec = jax.random.uniform(kw2, (D_IN, H), jnp.float32, -bound_d, bound_d)
    b_dec = jax.random.uniform(kb2, (D_IN,), jnp.float32, -bound_d, bound_d)

    params = prepare_params(w_enc, b_enc, w_dec, b_dec)

    # Feature-availability ladder (not a correctness hedge): prefer on-chip PRNG +
    # single-buffered weights; fall back to streamed dropout bits where the TPU
    # stateful PRNG / Buffered(1) are unavailable (e.g. interpret mode).
    configs = (
        dict(use_onchip_prng=True, single_buffer_weights=True),
        dict(use_onchip_prng=True, single_buffer_weights=False),
        dict(use_onchip_prng=False, single_buffer_weights=False),
    )
    result, last_err = None, None
    for cfg in configs:
        try:
            out, h = autoencoder_forward(x, params, dropout_seed=0, **cfg)
            jax.block_until_ready((out, h))
            result = (out, h)
            break
        except Exception as e:   # noqa: BLE001 - fall through to the next config
            last_err = e
    if result is None:
        raise last_err
    out, h = result

    assert out.shape == (B, D_IN) and out.dtype == jnp.float32
    assert h.shape == (B, H) and h.dtype == jnp.float32
    assert bool(jnp.all(jnp.isfinite(out))) and bool(jnp.all(jnp.isfinite(h)))
    print("KERNEL_OK")
</pallas_src>

<mosaic_0001>
module attributes {stable_mosaic.version = 11 : i64} {
  func.func @_ae_kernel_prng(%arg0: i32, %arg1: memref<1xi32, #tpu.memory_space<smem>>, %arg2: memref<8x256xf32, #tpu.memory_space<vmem>>, %arg3: memref<256x128xbf16, #tpu.memory_space<vmem>>, %arg4: memref<1x128xf32, #tpu.memory_space<vmem>>, %arg5: memref<128x256xbf16, #tpu.memory_space<vmem>>, %arg6: memref<1x256xf32, #tpu.memory_space<vmem>>, %arg7: memref<8x256xf32, #tpu.memory_space<vmem>>, %arg8: memref<8x128xf32, #tpu.memory_space<vmem>>) attributes {dimension_semantics = [#tpu.dimension_semantics<parallel>], iteration_bounds = array<i64: 1>, scalar_prefetch = 0 : i64, scratch_operands = 0 : i64, tpu.core_type = #tpu.core_type<tc>, window_params = [{transform_indices = @transform_0, window_bounds = array<i64: 1>}, {transform_indices = @transform_1, window_bounds = array<i64: 8, 256>}, {pipeline_mode = #tpu.pipeline_mode<synchronous>, transform_indices = @transform_2, window_bounds = array<i64: 256, 128>}, {pipeline_mode = #tpu.pipeline_mode<synchronous>, transform_indices = @transform_3, window_bounds = array<i64: 1, 128>}, {pipeline_mode = #tpu.pipeline_mode<synchronous>, transform_indices = @transform_4, window_bounds = array<i64: 128, 256>}, {pipeline_mode = #tpu.pipeline_mode<synchronous>, transform_indices = @transform_5, window_bounds = array<i64: 1, 256>}, {transform_indices = @transform_6, window_bounds = array<i64: 8, 256>}, {transform_indices = @transform_7, window_bounds = array<i64: 8, 128>}]} {
    %c0 = arith.constant 0 : index
    %0 = memref.load %arg1[%c0] : memref<1xi32, #tpu.memory_space<smem>>
    %1 = arith.addi %0, %arg0 : i32
    "tpu.prng_set_seed_32"(%1) : (i32) -> ()
    %2 = "tpu.prng_random_bits"() : () -> vector<8x128xi32>
    %3 = tpu.bitcast %2 : vector<8x128xi32> -> vector<8x128xi32>
    %c858993459_i32 = arith.constant 858993459 : i32
    %4 = vector.broadcast %c858993459_i32 : i32 to vector<8x128xi32>
    %5 = arith.cmpi uge, %3, %4 : vector<8x128xi32>
    %c0_0 = arith.constant 0 : index
    %c0_1 = arith.constant 0 : index
    %6 = vector.load %arg2[%c0_0, %c0_1] : memref<8x256xf32, #tpu.memory_space<vmem>>, vector<8x256xf32>
    %c0_2 = arith.constant 0 : index
    %c0_3 = arith.constant 0 : index
    %7 = vector.load %arg3[%c0_2, %c0_3] : memref<256x128xbf16, #tpu.memory_space<vmem>>, vector<256x128xbf16>
    %c0_4 = arith.constant 0 : index
    %c0_5 = arith.constant 0 : index
    %8 = vector.load %arg4[%c0_4, %c0_5] : memref<1x128xf32, #tpu.memory_space<vmem>>, vector<1x128xf32>
    %c0_6 = arith.constant 0 : index
    %c0_7 = arith.constant 0 : index
    %9 = vector.load %arg5[%c0_6, %c0_7] : memref<128x256xbf16, #tpu.memory_space<vmem>>, vector<128x256xbf16>
    %c0_8 = arith.constant 0 : index
    %c0_9 = arith.constant 0 : index
    %10 = vector.load %arg6[%c0_8, %c0_9] : memref<1x256xf32, #tpu.memory_space<vmem>>, vector<1x256xf32>
    %11 = arith.truncf %6 : vector<8x256xf32> to vector<8x256xbf16>
    %cst = arith.constant dense<0.000000e+00> : vector<8x128xf32>
    %12 = tpu.matmul %11, %7, %cst {dimension_numbers = #tpu.dot_dimension_numbers<[1], [0], [0], [1], [0, 0, 1, 1], [], []>} : vector<8x256xbf16>, vector<256x128xbf16>, vector<8x128xf32> -> vector<8x128xf32>
    %13 = vector.broadcast %8 : vector<1x128xf32> to vector<8x128xf32>
    %14 = arith.addf %12, %13 : vector<8x128xf32>
    %cst_10 = arith.constant 1.250000e+00 : f32
    %15 = vector.broadcast %cst_10 : f32 to vector<8x128xf32>
    %16 = arith.mulf %14, %15 : vector<8x128xf32>
    %cst_11 = arith.constant 0.000000e+00 : f32
    %17 = vector.broadcast %cst_11 : f32 to vector<8x128xf32>
    %18 = arith.select %5, %16, %17 : vector<8x128xi1>, vector<8x128xf32>
    %19 = arith.truncf %18 : vector<8x128xf32> to vector<8x128xbf16>
    %cst_12 = arith.constant dense<0.000000e+00> : vector<8x256xf32>
    %20 = tpu.matmul %19, %9, %cst_12 {dimension_numbers = #tpu.dot_dimension_numbers<[1], [0], [0], [1], [0, 0, 1, 1], [], []>} : vector<8x128xbf16>, vector<128x256xbf16>, vector<8x256xf32> -> vector<8x256xf32>
    %21 = vector.broadcast %10 : vector<1x256xf32> to vector<8x256xf32>
    %22 = arith.addf %20, %21 : vector<8x256xf32>
    %c0_13 = arith.constant 0 : index
    %c0_14 = arith.constant 0 : index
    %23 = vector.load %arg8[%c0_13, %c0_14] : memref<8x128xf32, #tpu.memory_space<vmem>>, vector<8x128xf32>
    tpu.vector_store %arg8[%c0_13, %c0_14], %18 {strides = array<i32>} : memref<8x128xf32, #tpu.memory_space<vmem>>, vector<8x128xf32>,
    %c0_15 = arith.constant 0 : index
    %c0_16 = arith.constant 0 : index
    %24 = vector.load %arg7[%c0_15, %c0_16] : memref<8x256xf32, #tpu.memory_space<vmem>>, vector<8x256xf32>
    tpu.vector_store %arg7[%c0_15, %c0_16], %22 {strides = array<i32>} : memref<8x256xf32, #tpu.memory_space<vmem>>, vector<8x256xf32>,
    return
  }
  func.func @transform_0(%arg0: i32) -> i32 {
    %c0_i32 = arith.constant 0 : i32
    %c0_i32_0 = arith.constant 0 : i32
    return %c0_i32 : i32
  }
  func.func @transform_1(%arg0: i32) -> (i32, i32) {
    %c0_i32 = arith.constant 0 : i32
    %c0_i32_0 = arith.constant 0 : i32
    return %arg0, %c0_i32 : i32, i32
  }
  func.func @transform_2(%arg0: i32) -> (i32, i32) {
    %c0_i32 = arith.constant 0 : i32
    %c0_i32_0 = arith.constant 0 : i32
    %c0_i32_1 = arith.constant 0 : i32
    return %c0_i32, %c0_i32_0 : i32, i32
  }
  func.func @transform_3(%arg0: i32) -> (i32, i32) {
    %c0_i32 = arith.constant 0 : i32
    %c0_i32_0 = arith.constant 0 : i32
    %c0_i32_1 = arith.constant 0 : i32
    return %c0_i32, %c0_i32_0 : i32, i32
  }
  func.func @transform_4(%arg0: i32) -> (i32, i32) {
    %c0_i32 = arith.constant 0 : i32
    %c0_i32_0 = arith.constant 0 : i32
    %c0_i32_1 = arith.constant 0 : i32
    return %c0_i32, %c0_i32_0 : i32, i32
  }
  func.func @transform_5(%arg0: i32) -> (i32, i32) {
    %c0_i32 = arith.constant 0 : i32
    %c0_i32_0 = arith.constant 0 : i32
    %c0_i32_1 = arith.constant 0 : i32
    return %c0_i32, %c0_i32_0 : i32, i32
  }
  func.func @transform_6(%arg0: i32) -> (i32, i32) {
    %c0_i32 = arith.constant 0 : i32
    %c0_i32_0 = arith.constant 0 : i32
    return %arg0, %c0_i32 : i32, i32
  }
  func.func @transform_7(%arg0: i32) -> (i32, i32) {
    %c0_i32 = arith.constant 0 : i32
    %c0_i32_0 = arith.constant 0 : i32
    return %arg0, %c0_i32 : i32, i32
  }
}

module attributes {stable_mosaic.version = 11 : i64} {
  func.func @_ae_kernel_prng(%arg0: i32, %arg1: memref<1xi32, #tpu.memory_space<smem>>, %arg2: memref<8x256xf32, #tpu.memory_space<vmem>>, %arg3: memref<256x128xbf16, #tpu.memory_space<vmem>>, %arg4: memref<1x128xf32, #tpu.memory_space<vmem>>, %arg5: memref<128x256xbf16, #tpu.memory_space<vmem>>, %arg6: memref<1x256xf32, #tpu.memory_space<vmem>>, %arg7: memref<8x256xf32, #tpu.memory_space<vmem>>, %arg8: memref<8x128xf32, #tpu.memory_space<vmem>>) attributes {dimension_semantics = [#tpu.dimension_semantics<parallel>], iteration_bounds = array<i64: 1>, scalar_prefetch = 0 : i64, scratch_operands = 0 : i64, tpu.core_type = #tpu.core_type<tc>, window_params = [{transform_indices = @transform_0, window_bounds = array<i64: 1>}, {transform_indices = @transform_1, window_bounds = array<i64: 8, 256>}, {pipeline_mode = #tpu.pipeline_mode<synchronous>, transform_indices = @transform_2, window_bounds = array<i64: 256, 128>}, {pipeline_mode = #tpu.pipeline_mode<synchronous>, transform_indices = @transform_3, window_bounds = array<i64: 1, 128>}, {pipeline_mode = #tpu.pipeline_mode<synchronous>, transform_indices = @transform_4, window_bounds = array<i64: 128, 256>}, {pipeline_mode = #tpu.pipeline_mode<synchronous>, transform_indices = @transform_5, window_bounds = array<i64: 1, 256>}, {transform_indices = @transform_6, window_bounds = array<i64: 8, 256>}, {transform_indices = @transform_7, window_bounds = array<i64: 8, 128>}]} {
    %c0 = arith.constant 0 : index
    %0 = memref.load %arg1[%c0] : memref<1xi32, #tpu.memory_space<smem>>
    %1 = arith.addi %0, %arg0 : i32
    "tpu.prng_set_seed_32"(%1) : (i32) -> ()
    %2 = "tpu.prng_random_bits"() : () -> vector<8x128xi32>
    %3 = tpu.bitcast %2 : vector<8x128xi32> -> vector<8x128xi32>
    %c858993459_i32 = arith.constant 858993459 : i32
    %4 = vector.broadcast %c858993459_i32 : i32 to vector<8x128xi32>
    %5 = arith.cmpi uge, %3, %4 : vector<8x128xi32>
    %c0_0 = arith.constant 0 : index
    %c0_1 = arith.constant 0 : index
    %6 = vector.load %arg2[%c0_0, %c0_1] : memref<8x256xf32, #tpu.memory_space<vmem>>, vector<8x256xf32>
    %c0_2 = arith.constant 0 : index
    %c0_3 = arith.constant 0 : index
    %7 = vector.load %arg3[%c0_2, %c0_3] : memref<256x128xbf16, #tpu.memory_space<vmem>>, vector<256x128xbf16>
    %c0_4 = arith.constant 0 : index
    %c0_5 = arith.constant 0 : index
    %8 = vector.load %arg4[%c0_4, %c0_5] : memref<1x128xf32, #tpu.memory_space<vmem>>, vector<1x128xf32>
    %c0_6 = arith.constant 0 : index
    %c0_7 = arith.constant 0 : index
    %9 = vector.load %arg5[%c0_6, %c0_7] : memref<128x256xbf16, #tpu.memory_space<vmem>>, vector<128x256xbf16>
    %c0_8 = arith.constant 0 : index
    %c0_9 = arith.constant 0 : index
    %10 = vector.load %arg6[%c0_8, %c0_9] : memref<1x256xf32, #tpu.memory_space<vmem>>, vector<1x256xf32>
    %11 = arith.truncf %6 : vector<8x256xf32> to vector<8x256xbf16>
    %cst = arith.constant dense<0.000000e+00> : vector<8x128xf32>
    %12 = tpu.matmul %11, %7, %cst {dimension_numbers = #tpu.dot_dimension_numbers<[1], [0], [0], [1], [0, 0, 1, 1], [], []>} : vector<8x256xbf16>, vector<256x128xbf16>, vector<8x128xf32> -> vector<8x128xf32>
    %13 = vector.broadcast %8 : vector<1x128xf32> to vector<8x128xf32>
    %14 = arith.addf %12, %13 : vector<8x128xf32>
    %cst_10 = arith.constant 1.250000e+00 : f32
    %15 = vector.broadcast %cst_10 : f32 to vector<8x128xf32>
    %16 = arith.mulf %14, %15 : vector<8x128xf32>
    %cst_11 = arith.constant 0.000000e+00 : f32
    %17 = vector.broadcast %cst_11 : f32 to vector<8x128xf32>
    %18 = arith.select %5, %16, %17 : vector<8x128xi1>, vector<8x128xf32>
    %19 = arith.truncf %18 : vector<8x128xf32> to vector<8x128xbf16>
    %cst_12 = arith.constant dense<0.000000e+00> : vector<8x256xf32>
    %20 = tpu.matmul %19, %9, %cst_12 {dimension_numbers = #tpu.dot_dimension_numbers<[1], [0], [0], [1], [0, 0, 1, 1], [], []>} : vector<8x128xbf16>, vector<128x256xbf16>, vector<8x256xf32> -> vector<8x256xf32>
    %21 = vector.broadcast %10 : vector<1x256xf32> to vector<8x256xf32>
    %22 = arith.addf %20, %21 : vector<8x256xf32>
    %c0_13 = arith.constant 0 : index
    %c0_14 = arith.constant 0 : index
    %23 = vector.load %arg8[%c0_13, %c0_14] : memref<8x128xf32, #tpu.memory_space<vmem>>, vector<8x128xf32>
    tpu.vector_store %arg8[%c0_13, %c0_14], %18 {strides = array<i32>} : memref<8x128xf32, #tpu.memory_space<vmem>>, vector<8x128xf32>,
    %c0_15 = arith.constant 0 : index
    %c0_16 = arith.constant 0 : index
    %24 = vector.load %arg7[%c0_15, %c0_16] : memref<8x256xf32, #tpu.memory_space<vmem>>, vector<8x256xf32>
    tpu.vector_store %arg7[%c0_15, %c0_16], %22 {strides = array<i32>} : memref<8x256xf32, #tpu.memory_space<vmem>>, vector<8x256xf32>,
    return
  }
  func.func @transform_0(%arg0: i32) -> i32 {
    %c0_i32 = arith.constant 0 : i32
    %c0_i32_0 = arith.constant 0 : i32
    return %c0_i32 : i32
  }
  func.func @transform_1(%arg0: i32) -> (i32, i32) {
    %c0_i32 = arith.constant 0 : i32
    %c0_i32_0 = arith.constant 0 : i32
    return %arg0, %c0_i32 : i32, i32
  }
  func.func @transform_2(%arg0: i32) -> (i32, i32) {
    %c0_i32 = arith.constant 0 : i32
    %c0_i32_0 = arith.constant 0 : i32
    %c0_i32_1 = arith.constant 0 : i32
    return %c0_i32, %c0_i32_0 : i32, i32
  }
  func.func @transform_3(%arg0: i32) -> (i32, i32) {
    %c0_i32 = arith.constant 0 : i32
    %c0_i32_0 = arith.constant 0 : i32
    %c0_i32_1 = arith.constant 0 : i32
    return %c0_i32, %c0_i32_0 : i32, i32
  }
  func.func @transform_4(%arg0: i32) -> (i32, i32) {
    %c0_i32 = arith.constant 0 : i32
    %c0_i32_0 = arith.constant 0 : i32
    %c0_i32_1 = arith.constant 0 : i32
    return %c0_i32, %c0_i32_0 : i32, i32
  }
  func.func @transform_5(%arg0: i32) -> (i32, i32) {
    %c0_i32 = arith.constant 0 : i32
    %c0_i32_0 = arith.constant 0 : i32
    %c0_i32_1 = arith.constant 0 : i32
    return %c0_i32, %c0_i32_0 : i32, i32
  }
  func.func @transform_6(%arg0: i32) -> (i32, i32) {
    %c0_i32 = arith.constant 0 : i32
    %c0_i32_0 = arith.constant 0 : i32
    return %arg0, %c0_i32 : i32, i32
  }
  func.func @transform_7(%arg0: i32) -> (i32, i32) {
    %c0_i32 = arith.constant 0 : i32
    %c0_i32_0 = arith.constant 0 : i32
    return %arg0, %c0_i32 : i32, i32
  }
}

module attributes {stable_mosaic.version = 11 : i64} {
  func.func @_ae_kernel_bits(%arg0: i32, %arg1: memref<8x256xf32, #tpu.memory_space<vmem>>, %arg2: memref<256x128xbf16, #tpu.memory_space<vmem>>, %arg3: memref<1x128xf32, #tpu.memory_space<vmem>>, %arg4: memref<128x256xbf16, #tpu.memory_space<vmem>>, %arg5: memref<1x256xf32, #tpu.memory_space<vmem>>, %arg6: memref<8x128xi32, #tpu.memory_space<vmem>>, %arg7: memref<8x256xf32, #tpu.memory_space<vmem>>, %arg8: memref<8x128xf32, #tpu.memory_space<vmem>>) attributes {dimension_semantics = [#tpu.dimension_semantics<parallel>], iteration_bounds = array<i64: 1>, scalar_prefetch = 0 : i64, scratch_operands = 0 : i64, tpu.core_type = #tpu.core_type<tc>, window_params = [{transform_indices = @transform_0, window_bounds = array<i64: 8, 256>}, {pipeline_mode = #tpu.pipeline_mode<synchronous>, transform_indices = @transform_1, window_bounds = array<i64: 256, 128>}, {pipeline_mode = #tpu.pipeline_mode<synchronous>, transform_indices = @transform_2, window_bounds = array<i64: 1, 128>}, {pipeline_mode = #tpu.pipeline_mode<synchronous>, transform_indices = @transform_3, window_bounds = array<i64: 128, 256>}, {pipeline_mode = #tpu.pipeline_mode<synchronous>, transform_indices = @transform_4, window_bounds = array<i64: 1, 256>}, {transform_indices = @transform_5, window_bounds = array<i64: 8, 128>}, {transform_indices = @transform_6, window_bounds = array<i64: 8, 256>}, {transform_indices = @transform_7, window_bounds = array<i64: 8, 128>}]} {
    %c0 = arith.constant 0 : index
    %c0_0 = arith.constant 0 : index
    %0 = vector.load %arg6[%c0, %c0_0] : memref<8x128xi32, #tpu.memory_space<vmem>>, vector<8x128xi32>
    %c858993459_i32 = arith.constant 858993459 : i32
    %1 = vector.broadcast %c858993459_i32 : i32 to vector<8x128xi32>
    %2 = arith.cmpi uge, %0, %1 : vector<8x128xi32>
    %c0_1 = arith.constant 0 : index
    %c0_2 = arith.constant 0 : index
    %3 = vector.load %arg1[%c0_1, %c0_2] : memref<8x256xf32, #tpu.memory_space<vmem>>, vector<8x256xf32>
    %c0_3 = arith.constant 0 : index
    %c0_4 = arith.constant 0 : index
    %4 = vector.load %arg2[%c0_3, %c0_4] : memref<256x128xbf16, #tpu.memory_space<vmem>>, vector<256x128xbf16>
    %c0_5 = arith.constant 0 : index
    %c0_6 = arith.constant 0 : index
    %5 = vector.load %arg3[%c0_5, %c0_6] : memref<1x128xf32, #tpu.memory_space<vmem>>, vector<1x128xf32>
    %c0_7 = arith.constant 0 : index
    %c0_8 = arith.constant 0 : index
    %6 = vector.load %arg4[%c0_7, %c0_8] : memref<128x256xbf16, #tpu.memory_space<vmem>>, vector<128x256xbf16>
    %c0_9 = arith.constant 0 : index
    %c0_10 = arith.constant 0 : index
    %7 = vector.load %arg5[%c0_9, %c0_10] : memref<1x256xf32, #tpu.memory_space<vmem>>, vector<1x256xf32>
    %8 = arith.truncf %3 : vector<8x256xf32> to vector<8x256xbf16>
    %cst = arith.constant dense<0.000000e+00> : vector<8x128xf32>
    %9 = tpu.matmul %8, %4, %cst {dimension_numbers = #tpu.dot_dimension_numbers<[1], [0], [0], [1], [0, 0, 1, 1], [], []>} : vector<8x256xbf16>, vector<256x128xbf16>, vector<8x128xf32> -> vector<8x128xf32>
    %10 = vector.broadcast %5 : vector<1x128xf32> to vector<8x128xf32>
    %11 = arith.addf %9, %10 : vector<8x128xf32>
    %cst_11 = arith.constant 1.250000e+00 : f32
    %12 = vector.broadcast %cst_11 : f32 to vector<8x128xf32>
    %13 = arith.mulf %11, %12 : vector<8x128xf32>
    %cst_12 = arith.constant 0.000000e+00 : f32
    %14 = vector.broadcast %cst_12 : f32 to vector<8x128xf32>
    %15 = arith.select %2, %13, %14 : vector<8x128xi1>, vector<8x128xf32>
    %16 = arith.truncf %15 : vector<8x128xf32> to vector<8x128xbf16>
    %cst_13 = arith.constant dense<0.000000e+00> : vector<8x256xf32>
    %17 = tpu.matmul %16, %6, %cst_13 {dimension_numbers = #tpu.dot_dimension_numbers<[1], [0], [0], [1], [0, 0, 1, 1], [], []>} : vector<8x128xbf16>, vector<128x256xbf16>, vector<8x256xf32> -> vector<8x256xf32>
    %18 = vector.broadcast %7 : vector<1x256xf32> to vector<8x256xf32>
    %19 = arith.addf %17, %18 : vector<8x256xf32>
    %c0_14 = arith.constant 0 : index
    %c0_15 = arith.constant 0 : index
    %20 = vector.load %arg8[%c0_14, %c0_15] : memref<8x128xf32, #tpu.memory_space<vmem>>, vector<8x128xf32>
    tpu.vector_store %arg8[%c0_14, %c0_15], %15 {strides = array<i32>} : memref<8x128xf32, #tpu.memory_space<vmem>>, vector<8x128xf32>,
    %c0_16 = arith.constant 0 : index
    %c0_17 = arith.constant 0 : index
    %21 = vector.load %arg7[%c0_16, %c0_17] : memref<8x256xf32, #tpu.memory_space<vmem>>, vector<8x256xf32>
    tpu.vector_store %arg7[%c0_16, %c0_17], %19 {strides = array<i32>} : memref<8x256xf32, #tpu.memory_space<vmem>>, vector<8x256xf32>,
    return
  }
  func.func @transform_0(%arg0: i32) -> (i32, i32) {
    %c0_i32 = arith.constant 0 : i32
    %c0_i32_0 = arith.constant 0 : i32
    return %arg0, %c0_i32 : i32, i32
  }
  func.func @transform_1(%arg0: i32) -> (i32, i32) {
    %c0_i32 = arith.constant 0 : i32
    %c0_i32_0 = arith.constant 0 : i32
    %c0_i32_1 = arith.constant 0 : i32
    return %c0_i32, %c0_i32_0 : i32, i32
  }
  func.func @transform_2(%arg0: i32) -> (i32, i32) {
    %c0_i32 = arith.constant 0 : i32
    %c0_i32_0 = arith.constant 0 : i32
    %c0_i32_1 = arith.constant 0 : i32
    return %c0_i32, %c0_i32_0 : i32, i32
  }
  func.func @transform_3(%arg0: i32) -> (i32, i32) {
    %c0_i32 = arith.constant 0 : i32
    %c0_i32_0 = arith.constant 0 : i32
    %c0_i32_1 = arith.constant 0 : i32
    return %c0_i32, %c0_i32_0 : i32, i32
  }
  func.func @transform_4(%arg0: i32) -> (i32, i32) {
    %c0_i32 = arith.constant 0 : i32
    %c0_i32_0 = arith.constant 0 : i32
    %c0_i32_1 = arith.constant 0 : i32
    return %c0_i32, %c0_i32_0 : i32, i32
  }
  func.func @transform_5(%arg0: i32) -> (i32, i32) {
    %c0_i32 = arith.constant 0 : i32
    %c0_i32_0 = arith.constant 0 : i32
    return %arg0, %c0_i32 : i32, i32
  }
  func.func @transform_6(%arg0: i32) -> (i32, i32) {
    %c0_i32 = arith.constant 0 : i32
    %c0_i32_0 = arith.constant 0 : i32
    return %arg0, %c0_i32 : i32, i32
  }
  func.func @transform_7(%arg0: i32) -> (i32, i32) {
    %c0_i32 = arith.constant 0 : i32
    %c0_i32_0 = arith.constant 0 : i32
    return %arg0, %c0_i32 : i32, i32
  }
}

</mosaic_0001>

<bundles_post_ra>
// kernel: tpu_custom_call.1
= control target key start
LH: loop header
LB: loop body
LE: loop exit
PB: predicated region body
PF: predicated region fallthrough
CT: control target
= control target key end

     0   :  { %14 = vsyncpa [#allocation4], 0  ;;  %s922_s0 = inlined_call_operand.<no memory space> [shape: s32[1], index: 0, kind: input, shape index: {}]   ;;  %s923_s1 = inlined_call_operand.hbm [shape: f32[8,256], index: 1, kind: input, shape index: {}]   ;;  %s924_s2 = inlined_call_operand.hbm [shape: bf16[256,128], index: 2, kind: input, shape index: {}]   ;;  %s925_s3 = inlined_call_operand.vmem [shape: f32[1,128], index: 3, kind: input, shape index: {}]   ;;  %s926_s4 = inlined_call_operand.hbm [shape: bf16[128,256], index: 4, kind: input, shape index: {}]   ;;  %s927_s5 = inlined_call_operand.vmem [shape: f32[1,256], index: 5, kind: input, shape index: {}]   ;;  %s928_s6 = inlined_call_operand.hbm [shape: f32[8,256], index: 6, kind: output, shape index: {0}]   ;;  %s929_s7 = inlined_call_operand.hbm [shape: f32[8,128], index: 7, kind: output, shape index: {1}]  }
   0x1   :  { %15 = vsyncpa [#allocation7], 0 }
   0x2   :  { %16 = vsyncpa [#allocation5], 0 }
   0x3   :  { %17 = vsyncpa [#allocation11], 0  ;;  %s784_s24 = smov [#allocation6]   ;;  %s666_s28 = scalar_lea.hbm %s924_s2, 2048 }
   0x4   :  { %s35_s25 = sshll.u32 %s784_s24, 4  ;;  %p667_p0 = scmp.ne.s32.totalorder %s924_s2, %s666_s28  ;;  %s36_s25 = int_to_ptr.vmem [resolvable:$true] %s35_s25 }
   0x5   :  { %p670_p1 = scmp.lt.u32.totalorder %s666_s28, %s924_s2 }
   0x7   :  { %p672_p2 = pnand %p670_p1, %p667_p0 }
   0x9   :  { %675 = shalt.err (!%p672_p2)
}
   0xa   :  { %s676_s10 = scalar_lea.vmem %s36_s25, 2048  ;;  %p681_p4 = scmp.lt.s32.totalorder %s36_s25, %s36_s25 }
   0xb   :  { %p677_p3 = scmp.ne.s32.totalorder %s36_s25, %s676_s10  ;;  %p682_p5 = scmp.lt.s32.totalorder %s676_s10, %s676_s10 }
   0xd   :  { %p683_p6 = por %p682_p5, %p681_p4 }
   0xf   :  { %p684_p7 = pnand %p683_p6, %p677_p3 }
  0x11   :  { %687 = shalt.err (!%p684_p7)
}
  0x12   :  { %s785_s11 = smov 64   ;;  %s786_s12 = smov 4  }
  0x13   :  { %41 = dma.hbm_to_vmem [thread:$0]  %s924_s2, 2048, %s36_s25, [#allocation7], %s785_s11, %s785_s11, %s786_s12  }
  0x14   :  { %s787_s15 = smov [#allocation3]   ;;  %s788_s17 = smov [#allocation8]  }
  0x15   :  { %s26_s16 = sshll.u32 %s787_s15, 4  ;;  %s49_s18 = sshll.u32 %s788_s17, 4  ;;  %s27_s16 = int_to_ptr.vmem [resolvable:$true] %s26_s16  ;;  %s50_s18 = int_to_ptr.vmem [resolvable:$true] %s49_s18 }
  0x16   :  { %s688_s21 = scalar_lea.hbm %s923_s1, 256 }
  0x17   :  { %p689_p8 = scmp.ne.s32.totalorder %s923_s1, %s688_s21  ;;  %p692_p9 = scmp.lt.u32.totalorder %s688_s21, %s923_s1 }
  0x19   :  { %p694_p10 = pnand %p692_p9, %p689_p8 }
  0x1b   :  { %697 = shalt.err (!%p694_p10)
}
  0x1c   :  { %s698_s2 = scalar_lea.vmem %s27_s16, 256  ;;  %p703_p12 = scmp.lt.s32.totalorder %s27_s16, %s27_s16 }
  0x1d   :  { %p699_p11 = scmp.ne.s32.totalorder %s27_s16, %s698_s2  ;;  %p704_p13 = scmp.lt.s32.totalorder %s698_s2, %s698_s2 }
  0x1f   :  { %p705_p0 = por %p704_p13, %p703_p12 }
  0x21   :  { %p706_p1 = pnand %p705_p0, %p699_p11 }
  0x23   :  { %709 = shalt.err (!%p706_p1)
}
  0x24   :  { %29 = dma.hbm_to_vmem [thread:$0]  %s923_s1, 256, %s27_s16, [#allocation4]  }
  0x25   :  { %s710_s30 = scalar_lea.hbm %s926_s4, 2048 }
  0x26   :  { %p711_p2 = scmp.ne.s32.totalorder %s926_s4, %s710_s30  ;;  %p714_p3 = scmp.lt.u32.totalorder %s710_s30, %s926_s4 }
  0x28   :  { %p716_p4 = pnand %p714_p3, %p711_p2 }
  0x2a   :  { %719 = shalt.err (!%p716_p4)
}
  0x2b   :  { %s720_s12 = scalar_lea.vmem %s50_s18, 2048  ;;  %p725_p6 = scmp.lt.s32.totalorder %s50_s18, %s50_s18 }
  0x2c   :  { %p721_p5 = scmp.ne.s32.totalorder %s50_s18, %s720_s12  ;;  %p726_p7 = scmp.lt.s32.totalorder %s720_s12, %s720_s12 }
  0x2e   :  { %p727_p8 = por %p726_p7, %p725_p6 }
  0x30   :  { %p728_p9 = pnand %p727_p8, %p721_p5 }
  0x32   :  { %731 = shalt.err (!%p728_p9)
}
  0x33   :  { %s789_s1 = smov 128   ;;  %s790_s13 = smov 8  }
  0x34   :  { %55 = dma.hbm_to_vmem [thread:$0]  %s926_s4, 2048, %s50_s18, [#allocation7], %s789_s1, %s789_s1, %s790_s13  }
  0x35   :  { %776 = dma.done.wait [#allocation4], 256  }
  0x36   :  { %777 = vsyncadd [#allocation4], 4294967040 }
  0x37   :  { %778 = dma.done.wait [#allocation7], 4096  }
  0x38   :  { %779 = vsyncadd [#allocation7], 4294963200  ;;  %v70_v0 = vlaneseq  ;;  %v873_v1 = vstv %s922_s0  ;;  %v626_v7 = vld [vmem:[#allocation6 + $0x40] sm:$0xff]   ;;  %v628_v10 = vld [vmem:[#allocation6 + $0x48] sm:$0xff]   ;;  %s792_s18 = smov [#allocation10]  }
  0x39   :  { %v627_v8 = vld [vmem:[#allocation6] sm:$0xff]   ;;  %594 = vmatprep.subr.bf16.mxu0 %v626_v7  ;;  %v629_v11 = vld [vmem:[#allocation6 + $0x8] sm:$0xff]   ;;  %v630_v13 = vld [vmem:[#allocation6 + $0x50] sm:$0xff]   ;;  %v72_v30 = vxor.u32 %v873_v1, %v873_v1  ;;  %s544_s19 = sshll.u32 %s792_s18, 4  ;;  %s545_s19 = int_to_ptr.vmem [resolvable:$true] %s544_s19 }
  0x3a   :  { %v74_v2 = vadd.s32 %v873_v1, %v70_v0  ;;  %595 = vmatpush3.bf16.msra.mxu0 %v627_v8  ;;  %v631_v17 = vld [vmem:[#allocation6 + $0x10] sm:$0xff]   ;;  %v632_v18 = vld [vmem:[#allocation6 + $0x58] sm:$0xff]   ;;  %v634_v24 = vld [vmem:[#allocation6 + $0x60] sm:$0xff]   ;;  %s732_s20 = scalar_lea.vmem %s545_s19, 128  ;;  %p737_p11 = scmp.lt.s32.totalorder %s545_s19, %s545_s19 }
  0x3b   :  { %596 = vmatprep.subr.bf16.mxu0 %v628_v10  ;;  %v633_v21 = vld [vmem:[#allocation6 + $0x18] sm:$0xff]   ;;  %v635_v26 = vld [vmem:[#allocation6 + $0x20] sm:$0xff]   ;;  %v636_v28 = vld [vmem:[#allocation6 + $0x68] sm:$0xff]   ;;  %v879_v40 = vxor.u32 466688986, %v72_v30  ;;  %p733_p10 = scmp.ne.s32.totalorder %s545_s19, %s732_s20  ;;  %p738_p12 = scmp.lt.s32.totalorder %s732_s20, %s732_s20 }
  0x3c   :  { %v75_v3 = vadd.s32 %v74_v2, %v74_v2  ;;  %v76_v4 = vshll.u32 %v74_v2, 13  ;;  %v77_v5 = vshrl.u32 %v74_v2, 19  ;;  %v195_v29 = vld [vmem:[#allocation3 + $0x8] sm:$0xff]  ;;  %v642_v32 = vld [vmem:[#allocation8 + $0x4] ss:$8 sps:$4 sm:$0xff]   ;;  %v638_v39 = vld [vmem:[#allocation6 + $0x70] sm:$0xff]  }
  0x3d   :  { %v247_v31 = vpack.c.bf16 %v195_v29, %v195_v29  ;;  %v644_v33 = vld [vmem:[#allocation8] ss:$8 sps:$4 sm:$0xff]   ;;  %v645_v35 = vld [vmem:[#allocation8 + $0x14] ss:$8 sps:$4 sm:$0xff]   ;;  %484 = vmatprep.subr.bf16.mxu1 %v642_v32  ;;  %v647_v42 = vld [vmem:[#allocation8 + $0x10] ss:$8 sps:$4 sm:$0xff]   ;;  %p739_p13 = por %p738_p12, %p737_p11 }
  0x3e   :  { %v78_v6 = vor.u32 %v77_v5, %v76_v4  ;;  %597 = vmatpush3.bf16.msra.mxu0 %v629_v11  ;;  %v637_v38 = vld [vmem:[#allocation6 + $0x28] sm:$0xff]   ;;  %485 = vmatpush1.bf16.msra.mxu1 %v644_v33  ;;  %v639_v45 = vld [vmem:[#allocation6 + $0x30] sm:$0xff]   ;;  %v640_v46 = vld [vmem:[#allocation6 + $0x78] sm:$0xff]  }
  0x3f   :  { %598 = vmatprep.subr.bf16.mxu0 %v630_v13  ;;  %382 = vmatprep.mubr.bf16.mxu0 %v247_v31  ;;  %v648_v43 = vld [vmem:[#allocation8 + $0x24] ss:$8 sps:$4 sm:$0xff]   ;;  %v650_v47 = vld [vmem:[#allocation8 + $0x20] ss:$8 sps:$4 sm:$0xff]   ;;  %v651_v50 = vld [vmem:[#allocation8 + $0x34] ss:$8 sps:$4 sm:$0xff]   ;;  %p740_p0 = pnand %p739_p13, %p733_p10 }
  0x40   :  { %v79_v9 = vxor.u32 %v78_v6, %v75_v3  ;;  %486 = vmatprep.subr.bf16.mxu1 %v645_v35  ;;  %v641_v52 = vld [vmem:[#allocation6 + $0x38] sm:$0xff]   ;;  %v194_v53 = vld [vmem:[#allocation3] sm:$0xff]  ;;  %v654_v59 = vld [vmem:[#allocation8 + $0x44] ss:$8 sps:$4 sm:$0xff]  }
  0x41   :  { %v653_v57 = vld [vmem:[#allocation8 + $0x30] ss:$8 sps:$4 sm:$0xff]   ;;  %v246_v58 = vpack.c.bf16 %v194_v53, %v194_v53  ;;  %v656_v62 = vld [vmem:[#allocation8 + $0x40] ss:$8 sps:$4 sm:$0xff]   ;;  %v657_v63 = vld [vmem:[#allocation8 + $0x54] ss:$8 sps:$4 sm:$0xff]  }
  0x42   :  { %v81_v12 = vshll.u32 %v79_v9, 15  ;;  %v80_v14 = vadd.s32 %v79_v9, %v75_v3  ;;  %v82_v15 = vshrl.u32 %v79_v9, 17  ;;  %599 = vmatpush3.bf16.msra.mxu0 %v631_v17  ;;  %487 = vmatpush1.bf16.msra.mxu1 %v647_v42  ;;  %v659_v6 = vld [vmem:[#allocation8 + $0x50] ss:$8 sps:$4 sm:$0xff]  }
  0x43   :  { %600 = vmatprep.subr.bf16.mxu0 %v632_v18  ;;  %488 = vmatprep.subr.bf16.mxu1 %v648_v43 }
  0x44   :  { %v83_v16 = vor.u32 %v82_v15, %v81_v12 }
  0x46   :  { %v84_v19 = vxor.u32 %v83_v16, %v80_v14  ;;  %601 = vmatpush3.bf16.msra.mxu0 %v633_v21  ;;  %489 = vmatpush1.bf16.msra.mxu1 %v650_v47 }
  0x47   :  { %602 = vmatprep.subr.bf16.mxu0 %v634_v24  ;;  %490 = vmatprep.subr.bf16.mxu1 %v651_v50 }
  0x48   :  { %v86_v20 = vshll.u32 %v84_v19, 26  ;;  %v85_v22 = vadd.s32 %v84_v19, %v80_v14  ;;  %v87_v23 = vshrl.u32 %v84_v19, 6 }
  0x4a   :  { %v88_v25 = vor.u32 %v87_v23, %v86_v20  ;;  %603 = vmatpush3.bf16.msra.mxu0 %v635_v26  ;;  %491 = vmatpush1.bf16.msra.mxu1 %v653_v57 }
  0x4b   :  { %604 = vmatprep.subr.bf16.mxu0 %v636_v28  ;;  %492 = vmatprep.subr.bf16.mxu1 %v654_v59 }
  0x4c   :  { %v89_v27 = vxor.u32 %v88_v25, %v85_v22 }
  0x4e   :  { %v91_v34 = vshll.u32 %v89_v27, 6  ;;  %v90_v36 = vadd.s32 %v89_v27, %v85_v22  ;;  %v92_v37 = vshrl.u32 %v89_v27, 26  ;;  %605 = vmatpush3.bf16.msra.mxu0 %v637_v38  ;;  %493 = vmatpush1.bf16.msra.mxu1 %v656_v62 }
  0x4f   :  { %606 = vmatprep.subr.bf16.mxu0 %v638_v39  ;;  %494 = vmatprep.subr.bf16.mxu1 %v657_v63 }
  0x50   :  { %v93_v41 = vor.u32 %v92_v37, %v91_v34  ;;  %v95_v48 = vadd.s32 %v90_v36, %v873_v1 }
  0x52   :  { %v94_v44 = vxor.u32 %v93_v41, %v90_v36  ;;  %607 = vmatpush3.bf16.msra.mxu0 %v639_v45  ;;  %495 = vmatpush1.bf16.msra.mxu1 %v659_v6 }
  0x53   :  { %608 = vmatprep.subr.bf16.mxu0 %v640_v46 }
  0x54   :  { %v96_v49 = vadd.s32 %v94_v44, %v879_v40 }
  0x56   :  { %v97_v51 = vadd.s32 1, %v96_v49  ;;  %609 = vmatpush3.bf16.msra.mxu0 %v641_v52 }
  0x58   :  { %v98_v54 = vadd.s32 %v97_v51, %v95_v48  ;;  %v99_v55 = vshll.u32 %v97_v51, 17  ;;  %v100_v56 = vshrl.u32 %v97_v51, 15 }
  0x59   :  { %383 = vmatmul.mubr.bf16.vlgmr.msra.gmra.mrb[0].mxu0 %v246_v58 }
  0x5a   :  { %v101_v60 = vor.u32 %v100_v56, %v99_v55 }
  0x5c   :  { %v102_v61 = vxor.u32 %v101_v60, %v98_v54 }
  0x5e   :  { %v103_v2 = vadd.s32 %v102_v61, %v98_v54  ;;  %v104_v3 = vshll.u32 %v102_v61, 29  ;;  %v105_v4 = vshrl.u32 %v102_v61, 3 }
  0x60   :  { %v106_v5 = vor.u32 %v105_v4, %v104_v3 }
  0x62   :  { %v107_v7 = vxor.u32 %v106_v5, %v103_v2 }
  0x64   :  { %v108_v8 = vadd.s32 %v107_v7, %v103_v2  ;;  %v109_v9 = vshll.u32 %v107_v7, 16  ;;  %v110_v10 = vshrl.u32 %v107_v7, 16 }
  0x66   :  { %v111_v11 = vor.u32 %v110_v10, %v109_v9 }
  0x68   :  { %v112_v12 = vxor.u32 %v111_v11, %v108_v8  ;;  %v660_v11 = vld [vmem:[#allocation8 + $0x64] ss:$8 sps:$4 sm:$0xff]  }
  0x69   :  { %496 = vmatprep.subr.bf16.mxu1 %v660_v11 }
  0x6a   :  { %v113_v13 = vadd.s32 %v112_v12, %v108_v8  ;;  %v114_v14 = vshll.u32 %v112_v12, 24  ;;  %v115_v15 = vshrl.u32 %v112_v12, 8  ;;  %v662_v12 = vld [vmem:[#allocation8 + $0x60] ss:$8 sps:$4 sm:$0xff]  }
  0x6b   :  { %497 = vmatpush1.bf16.msra.mxu1 %v662_v12 }
  0x6c   :  { %v116_v16 = vor.u32 %v115_v15, %v114_v14  ;;  %v118_v18 = vadd.s32 %v113_v13, %v879_v40 }
  0x6e   :  { %v117_v17 = vxor.u32 %v116_v16, %v113_v13 }
  0x70   :  { %v119_v19 = vadd.s32 %v117_v17, %v873_v1  ;;  %v663_v17 = vld [vmem:[#allocation8 + $0x74] ss:$8 sps:$4 sm:$0xff]  }
  0x71   :  { %498 = vmatprep.subr.bf16.mxu1 %v663_v17 }
  0x72   :  { %v120_v20 = vadd.s32 2, %v119_v19  ;;  %v665_v19 = vld [vmem:[#allocation8 + $0x70] ss:$8 sps:$4 sm:$0xff]  }
  0x73   :  { %499 = vmatpush1.bf16.msra.mxu1 %v665_v19 }
  0x74   :  { %v121_v21 = vadd.s32 %v120_v20, %v118_v18  ;;  %v122_v22 = vshll.u32 %v120_v20, 13  ;;  %v123_v23 = vshrl.u32 %v120_v20, 19 }
  0x76   :  { %v124_v24 = vor.u32 %v123_v23, %v122_v22 }
  0x78   :  { %v125_v25 = vxor.u32 %v124_v24, %v121_v21  ;;  %v791_v24 = vmov 0  }
  0x79   :  { %516 = vmatprep.mubr.bf16.mxu1 %v791_v24 }
  0x7a   :  { %v126_v26 = vadd.s32 %v125_v25, %v121_v21  ;;  %v127_v27 = vshll.u32 %v125_v25, 15  ;;  %v128_v28 = vshrl.u32 %v125_v25, 17 }
  0x7c   :  { %v129_v29 = vor.u32 %v128_v28, %v127_v27 }
  0x7e   :  { %v130_v30 = vxor.u32 %v129_v29, %v126_v26 }
  0x80   :  { %v131_v31 = vadd.s32 %v130_v30, %v126_v26  ;;  %v132_v32 = vshll.u32 %v130_v30, 26  ;;  %v133_v33 = vshrl.u32 %v130_v30, 6 }
  0x82   :  { %v134_v34 = vor.u32 %v133_v33, %v132_v32 }
  0x84   :  { %v135_v35 = vxor.u32 %v134_v34, %v131_v31 }
  0x86   :  { %v136_v36 = vadd.s32 %v135_v35, %v131_v31  ;;  %v137_v37 = vshll.u32 %v135_v35, 6  ;;  %v138_v38 = vshrl.u32 %v135_v35, 26 }
  0x88   :  { %v139_v39 = vor.u32 %v138_v38, %v137_v37  ;;  %v141_v42 = vadd.s32 %v136_v36, %v873_v1 }
  0x8a   :  { %v140_v41 = vxor.u32 %v139_v39, %v136_v36  ;;  %v558_v36 = vld [vmem:[%s925_s3] ss:$0 sm:$0xff] }
  0x8c   :  { %v142_v43 = vadd.s32 %v140_v41, %v873_v1 }
  0x8e   :  { %v143_v44 = vadd.s32 3, %v142_v43 }
  0x90   :  { %v144_v45 = vadd.s32 %v143_v44, %v141_v42  ;;  %v145_v46 = vshll.u32 %v143_v44, 17  ;;  %v146_v47 = vshrl.u32 %v143_v44, 15 }
  0x92   :  { %v147_v48 = vor.u32 %v146_v47, %v145_v46 }
  0x94   :  { %v148_v49 = vxor.u32 %v147_v48, %v144_v45 }
  0x96   :  { %v149_v50 = vadd.s32 %v148_v49, %v144_v45  ;;  %v150_v51 = vshll.u32 %v148_v49, 29  ;;  %v151_v52 = vshrl.u32 %v148_v49, 3 }
  0x98   :  { %v152_v53 = vor.u32 %v151_v52, %v150_v51 }
  0x9a   :  { %v153_v54 = vxor.u32 %v152_v53, %v149_v50 }
  0x9c   :  { %v154_v55 = vadd.s32 %v153_v54, %v149_v50  ;;  %v155_v56 = vshll.u32 %v153_v54, 16  ;;  %v156_v57 = vshrl.u32 %v153_v54, 16 }
  0x9e   :  { %v157_v58 = vor.u32 %v156_v57, %v155_v56 }
  0xa0   :  { %v158_v59 = vxor.u32 %v157_v58, %v154_v55 }
  0xa2   :  { %v159_v60 = vadd.s32 %v158_v59, %v154_v55  ;;  %v160_v61 = vshll.u32 %v158_v59, 24  ;;  %v161_v62 = vshrl.u32 %v158_v59, 8 }
  0xa4   :  { %v162_v63 = vor.u32 %v161_v62, %v160_v61  ;;  %v164_v3 = vadd.s32 %v159_v60, %v873_v1 }
  0xa6   :  { %v163_v2 = vxor.u32 %v162_v63, %v159_v60 }
  0xa8   :  { %v165_v4 = vadd.s32 %v163_v2, %v879_v40 }
  0xaa   :  { %v166_v5 = vadd.s32 4, %v165_v4 }
  0xac   :  { %v167_v6 = vadd.s32 %v166_v5, %v164_v3  ;;  %v168_v7 = vshll.u32 %v166_v5, 13  ;;  %v169_v8 = vshrl.u32 %v166_v5, 19 }
  0xae   :  { %v170_v9 = vor.u32 %v169_v8, %v168_v7 }
  0xb0   :  { %v171_v10 = vxor.u32 %v170_v9, %v167_v6 }
  0xb2   :  { %v172_v13 = vadd.s32 %v171_v10, %v167_v6  ;;  %v173_v14 = vshll.u32 %v171_v10, 15  ;;  %v174_v15 = vshrl.u32 %v171_v10, 17 }
  0xb4   :  { %v175_v16 = vor.u32 %v174_v15, %v173_v14 }
  0xb6   :  { %v176_v18 = vxor.u32 %v175_v16, %v172_v13 }
  0xb8   :  { %v177_v20 = vadd.s32 %v176_v18, %v172_v13  ;;  %v178_v21 = vshll.u32 %v176_v18, 26  ;;  %v179_v22 = vshrl.u32 %v176_v18, 6 }
  0xba   :  { %v180_v23 = vor.u32 %v179_v22, %v178_v21 }
  0xbc   :  { %v181_v25 = vxor.u32 %v180_v23, %v177_v20 }
  0xbe   :  { %v182_v26 = vadd.s32 %v181_v25, %v177_v20  ;;  %v183_v27 = vshll.u32 %v181_v25, 6  ;;  %v184_v28 = vshrl.u32 %v181_v25, 26 }
  0xc0   :  { %v185_v29 = vor.u32 %v184_v28, %v183_v27  ;;  %v187_v31 = vadd.s32 %v182_v26, %v879_v40 }
  0xc2   :  { %v186_v30 = vxor.u32 %v185_v29, %v182_v26 }
  0xc4   :  { %v188_v32 = vadd.s32 %v186_v30, %v873_v1 }
  0xc6   :  { %v189_v33 = vadd.s32 5, %v188_v32 }
  0xc8   :  { %v190_v34 = vxor.u32 %v189_v33, %v187_v31 }
  0xca   :  { %191 = set.rngseed %v190_v34 }
  0xcb   :  { %v192_v38 = vrng }
  0xcc   :  { %vm193_vm0 = vcmp.ge.u32.totalorder %v192_v38, 858993459 }
  0xcd   :  { %vm591_vm1 = vmpackc.low %vm193_vm0, %vm193_vm0 }
 0x12c   :  { %v610_v35 = vpop.f32.mrb[0].mxu0 }
 0x12d   :  { %v611_v37 = vpop.f32.mrb[1].mxu0 }
 0x12e   :  { %v612_v39 = vadd.f32 %v611_v37, %v610_v35  ;;  %v613_v41 = vpop.f32.mrb[2].mxu0 }
 0x12f   :  { %v614_v42 = vpop.f32.mrb[3].mxu0 }
 0x130   :  { %v385_v43 = vadd.f32 %v612_v39, %v558_v36 }
 0x132   :  { %v390_v44 = vmul.f32 1.25, %v385_v43 }
 0x134   :  { %v391_v40 = vsel %vm193_vm0, %v390_v44, 0.0  ;;  %v592_v45 = vpack.c.bf16 %v390_v44, %v390_v44 }
 0x135   :  { %525 = vst [vmem:[#allocation10] sm:$0xff] %v391_v40 }
 0x136   :  { %593 = vmatmul.mubr.msk.bf16.vlgmr.msra.gmra.mrb[0].mxu1 %vm591_vm1, %v592_v45 }
 0x137   :  { %743 = shalt.err (!%p740_p0)
}
 0x138   :  { %s744_s22 = scalar_lea.hbm %s929_s7, 128 }
 0x139   :  { %p745_p1 = scmp.ne.s32.totalorder %s929_s7, %s744_s22  ;;  %p748_p2 = scmp.lt.u32.totalorder %s744_s22, %s929_s7 }
 0x13b   :  { %p750_p3 = pnand %p748_p2, %p745_p1 }
 0x13d   :  { %753 = shalt.err (!%p750_p3)
}
 0x13e   :  { %547 = dma.vmem_to_hbm [thread:$0]  %s545_s19, 128, %s929_s7, [#allocation11]   ;;  %v395_v1 = vshrl.u32 %v70_v0, 7  ;;  %v245_v47 = vld [vmem:[%s927_s5] sm:$0x3] }
 0x13f   :  { %s793_s30 = smov [#allocation9]  }
 0x140   :  { %v396_v46 = vsub.s32 0, %v395_v1  ;;  %v400_v48 = vsub.s32 1, %v395_v1  ;;  %s534_s8 = sshll.u32 %s793_s30, 4  ;;  %s535_s8 = int_to_ptr.vmem [resolvable:$true] %s534_s8 }
 0x141   :  { %s754_s7 = scalar_lea.vmem %s535_s8, 256  ;;  %p759_p5 = scmp.lt.s32.totalorder %s535_s8, %s535_s8 }
 0x142   :  { %v397_v49 = vrot.slane %v245_v47, %v396_v46  ;;  %v401_v50 = vrot.slane %v245_v47, %v400_v48  ;;  %p755_p4 = scmp.ne.s32.totalorder %s535_s8, %s754_s7  ;;  %p760_p6 = scmp.lt.s32.totalorder %s754_s7, %s754_s7 }
 0x144   :  { %p761_p7 = por %p760_p6, %p759_p5 }
 0x146   :  { %p762_p8 = pnand %p761_p7, %p755_p4 }
 0x209   :  { %v518_v51 = vpop.f32.mrb[0].mxu1 }
 0x20a   :  { %v519_v52 = vadd.f32 %v518_v51, %v397_v49  ;;  %v520_v53 = vpop.f32.mrb[1].mxu1 }
 0x20b   :  { %v521_v54 = vadd.f32 %v520_v53, %v401_v50  ;;  %v522_v55 = vpop.f32.mrb[2].mxu1 }
 0x20c   :  { %526 = vst [vmem:[#allocation9] sm:$0xff] %v519_v52  ;;  %v523_v56 = vpop.f32.mrb[3].mxu1 }
 0x20d   :  { %527 = vst [vmem:[#allocation9 + $0x8] sm:$0xff] %v521_v54 }
 0x20e   :  { %765 = shalt.err (!%p762_p8)
}
 0x20f   :  { %s766_s10 = scalar_lea.hbm %s928_s6, 256 }
 0x210   :  { %p767_p9 = scmp.ne.s32.totalorder %s928_s6, %s766_s10  ;;  %p770_p10 = scmp.lt.u32.totalorder %s766_s10, %s928_s6 }
 0x212   :  { %p772_p11 = pnand %p770_p10, %p767_p9 }
 0x214   :  { %775 = shalt.err (!%p772_p11)
}
 0x215   :  { %537 = dma.vmem_to_hbm [thread:$0]  %s535_s8, 256, %s928_s6, [#allocation5]  }
 0x216   :  { %780 = dma.done.wait [#allocation5], 256  }
 0x217   :  { %781 = vsyncadd [#allocation5], 4294967040 }
 0x218   :  { %782 = dma.done.wait [#allocation11], 128  }
 0x219   :  { %783 = vsyncadd [#allocation11], 4294967168 }
 0x21a   :  { %554 = vsyncpa [#allocation4], 1 }
 0x21b   :  { %555 = vsyncpa [#allocation7], 1 }
 0x21c   :  { %556 = vsyncpa [#allocation5], 1 }
 0x21d   :  { %557 = vsyncpa [#allocation11], 1 }

// kernel: tpu_custom_call.1
= control target key start
LH: loop header
LB: loop body
LE: loop exit
PB: predicated region body
PF: predicated region fallthrough
CT: control target
= control target key end

     0   :  { %14 = vsyncpa [#allocation4], 0  ;;  %s922_s0 = inlined_call_operand.<no memory space> [shape: s32[1], index: 0, kind: input, shape index: {}]   ;;  %s923_s1 = inlined_call_operand.hbm [shape: f32[8,256], index: 1, kind: input, shape index: {}]   ;;  %s924_s2 = inlined_call_operand.hbm [shape: bf16[256,128], index: 2, kind: input, shape index: {}]   ;;  %s925_s3 = inlined_call_operand.vmem [shape: f32[1,128], index: 3, kind: input, shape index: {}]   ;;  %s926_s4 = inlined_call_operand.hbm [shape: bf16[128,256], index: 4, kind: input, shape index: {}]   ;;  %s927_s5 = inlined_call_operand.vmem [shape: f32[1,256], index: 5, kind: input, shape index: {}]   ;;  %s928_s6 = inlined_call_operand.hbm [shape: f32[8,256], index: 6, kind: output, shape index: {0}]   ;;  %s929_s7 = inlined_call_operand.hbm [shape: f32[8,128], index: 7, kind: output, shape index: {1}]  }
   0x1   :  { %15 = vsyncpa [#allocation7], 0 }
   0x2   :  { %16 = vsyncpa [#allocation5], 0 }
   0x3   :  { %17 = vsyncpa [#allocation11], 0  ;;  %s784_s24 = smov [#allocation6]   ;;  %s666_s28 = scalar_lea.hbm %s924_s2, 2048 }
   0x4   :  { %s35_s25 = sshll.u32 %s784_s24, 4  ;;  %p667_p0 = scmp.ne.s32.totalorder %s924_s2, %s666_s28  ;;  %s36_s25 = int_to_ptr.vmem [resolvable:$true] %s35_s25 }
   0x5   :  { %p670_p1 = scmp.lt.u32.totalorder %s666_s28, %s924_s2 }
   0x7   :  { %p672_p2 = pnand %p670_p1, %p667_p0 }
   0x9   :  { %675 = shalt.err (!%p672_p2)
}
   0xa   :  { %s676_s10 = scalar_lea.vmem %s36_s25, 2048  ;;  %p681_p4 = scmp.lt.s32.totalorder %s36_s25, %s36_s25 }
   0xb   :  { %p677_p3 = scmp.ne.s32.totalorder %s36_s25, %s676_s10  ;;  %p682_p5 = scmp.lt.s32.totalorder %s676_s10, %s676_s10 }
   0xd   :  { %p683_p6 = por %p682_p5, %p681_p4 }
   0xf   :  { %p684_p7 = pnand %p683_p6, %p677_p3 }
  0x11   :  { %687 = shalt.err (!%p684_p7)
}
  0x12   :  { %s785_s11 = smov 64   ;;  %s786_s12 = smov 4  }
  0x13   :  { %41 = dma.hbm_to_vmem [thread:$0]  %s924_s2, 2048, %s36_s25, [#allocation7], %s785_s11, %s785_s11, %s786_s12  }
  0x14   :  { %s787_s15 = smov [#allocation3]   ;;  %s788_s17 = smov [#allocation8]  }
  0x15   :  { %s26_s16 = sshll.u32 %s787_s15, 4  ;;  %s49_s18 = sshll.u32 %s788_s17, 4  ;;  %s27_s16 = int_to_ptr.vmem [resolvable:$true] %s26_s16  ;;  %s50_s18 = int_to_ptr.vmem [resolvable:$true] %s49_s18 }
  0x16   :  { %s688_s21 = scalar_lea.hbm %s923_s1, 256 }
  0x17   :  { %p689_p8 = scmp.ne.s32.totalorder %s923_s1, %s688_s21  ;;  %p692_p9 = scmp.lt.u32.totalorder %s688_s21, %s923_s1 }
  0x19   :  { %p694_p10 = pnand %p692_p9, %p689_p8 }
  0x1b   :  { %697 = shalt.err (!%p694_p10)
}
  0x1c   :  { %s698_s2 = scalar_lea.vmem %s27_s16, 256  ;;  %p703_p12 = scmp.lt.s32.totalorder %s27_s16, %s27_s16 }
  0x1d   :  { %p699_p11 = scmp.ne.s32.totalorder %s27_s16, %s698_s2  ;;  %p704_p13 = scmp.lt.s32.totalorder %s698_s2, %s698_s2 }
  0x1f   :  { %p705_p0 = por %p704_p13, %p703_p12 }
  0x21   :  { %p706_p1 = pnand %p705_p0, %p699_p11 }
  0x23   :  { %709 = shalt.err (!%p706_p1)
}
  0x24   :  { %29 = dma.hbm_to_vmem [thread:$0]  %s923_s1, 256, %s27_s16, [#allocation4]  }
  0x25   :  { %s710_s30 = scalar_lea.hbm %s926_s4, 2048 }
  0x26   :  { %p711_p2 = scmp.ne.s32.totalorder %s926_s4, %s710_s30  ;;  %p714_p3 = scmp.lt.u32.totalorder %s710_s30, %s926_s4 }
  0x28   :  { %p716_p4 = pnand %p714_p3, %p711_p2 }
  0x2a   :  { %719 = shalt.err (!%p716_p4)
}
  0x2b   :  { %s720_s12 = scalar_lea.vmem %s50_s18, 2048  ;;  %p725_p6 = scmp.lt.s32.totalorder %s50_s18, %s50_s18 }
  0x2c   :  { %p721_p5 = scmp.ne.s32.totalorder %s50_s18, %s720_s12  ;;  %p726_p7 = scmp.lt.s32.totalorder %s720_s12, %s720_s12 }
  0x2e   :  { %p727_p8 = por %p726_p7, %p725_p6 }
  0x30   :  { %p728_p9 = pnand %p727_p8, %p721_p5 }
  0x32   :  { %731 = shalt.err (!%p728_p9)
}
  0x33   :  { %s789_s1 = smov 128   ;;  %s790_s13 = smov 8  }
  0x34   :  { %55 = dma.hbm_to_vmem [thread:$0]  %s926_s4, 2048, %s50_s18, [#allocation7], %s789_s1, %s789_s1, %s790_s13  }
  0x35   :  { %776 = dma.done.wait [#allocation4], 256  }
  0x36   :  { %777 = vsyncadd [#allocation4], 4294967040 }
  0x37   :  { %778 = dma.done.wait [#allocation7], 4096  }
  0x38   :  { %779 = vsyncadd [#allocation7], 4294963200  ;;  %v70_v0 = vlaneseq  ;;  %v873_v1 = vstv %s922_s0  ;;  %v626_v7 = vld [vmem:[#allocation6 + $0x40] sm:$0xff]   ;;  %v628_v10 = vld [vmem:[#allocation6 + $0x48] sm:$0xff]   ;;  %s792_s18 = smov [#allocation10]  }
  0x39   :  { %v627_v8 = vld [vmem:[#allocation6] sm:$0xff]   ;;  %594 = vmatprep.subr.bf16.mxu0 %v626_v7  ;;  %v629_v11 = vld [vmem:[#allocation6 + $0x8] sm:$0xff]   ;;  %v630_v13 = vld [vmem:[#allocation6 + $0x50] sm:$0xff]   ;;  %v72_v30 = vxor.u32 %v873_v1, %v873_v1  ;;  %s544_s19 = sshll.u32 %s792_s18, 4  ;;  %s545_s19 = int_to_ptr.vmem [resolvable:$true] %s544_s19 }
  0x3a   :  { %v74_v2 = vadd.s32 %v873_v1, %v70_v0  ;;  %595 = vmatpush3.bf16.msra.mxu0 %v627_v8  ;;  %v631_v17 = vld [vmem:[#allocation6 + $0x10] sm:$0xff]   ;;  %v632_v18 = vld [vmem:[#allocation6 + $0x58] sm:$0xff]   ;;  %v634_v24 = vld [vmem:[#allocation6 + $0x60] sm:$0xff]   ;;  %s732_s20 = scalar_lea.vmem %s545_s19, 128  ;;  %p737_p11 = scmp.lt.s32.totalorder %s545_s19, %s545_s19 }
  0x3b   :  { %596 = vmatprep.subr.bf16.mxu0 %v628_v10  ;;  %v633_v21 = vld [vmem:[#allocation6 + $0x18] sm:$0xff]   ;;  %v635_v26 = vld [vmem:[#allocation6 + $0x20] sm:$0xff]   ;;  %v636_v28 = vld [vmem:[#allocation6 + $0x68] sm:$0xff]   ;;  %v879_v40 = vxor.u32 466688986, %v72_v30  ;;  %p733_p10 = scmp.ne.s32.totalorder %s545_s19, %s732_s20  ;;  %p738_p12 = scmp.lt.s32.totalorder %s732_s20, %s732_s20 }
  0x3c   :  { %v75_v3 = vadd.s32 %v74_v2, %v74_v2  ;;  %v76_v4 = vshll.u32 %v74_v2, 13  ;;  %v77_v5 = vshrl.u32 %v74_v2, 19  ;;  %v195_v29 = vld [vmem:[#allocation3 + $0x8] sm:$0xff]  ;;  %v642_v32 = vld [vmem:[#allocation8 + $0x4] ss:$8 sps:$4 sm:$0xff]   ;;  %v638_v39 = vld [vmem:[#allocation6 + $0x70] sm:$0xff]  }
  0x3d   :  { %v247_v31 = vpack.c.bf16 %v195_v29, %v195_v29  ;;  %v644_v33 = vld [vmem:[#allocation8] ss:$8 sps:$4 sm:$0xff]   ;;  %v645_v35 = vld [vmem:[#allocation8 + $0x14] ss:$8 sps:$4 sm:$0xff]   ;;  %484 = vmatprep.subr.bf16.mxu1 %v642_v32  ;;  %v647_v42 = vld [vmem:[#allocation8 + $0x10] ss:$8 sps:$4 sm:$0xff]   ;;  %p739_p13 = por %p738_p12, %p737_p11 }
  0x3e   :  { %v78_v6 = vor.u32 %v77_v5, %v76_v4  ;;  %597 = vmatpush3.bf16.msra.mxu0 %v629_v11  ;;  %v637_v38 = vld [vmem:[#allocation6 + $0x28] sm:$0xff]   ;;  %485 = vmatpush1.bf16.msra.mxu1 %v644_v33  ;;  %v639_v45 = vld [vmem:[#allocation6 + $0x30] sm:$0xff]   ;;  %v640_v46 = vld [vmem:[#allocation6 + $0x78] sm:$0xff]  }
  0x3f   :  { %598 = vmatprep.subr.bf16.mxu0 %v630_v13  ;;  %382 = vmatprep.mubr.bf16.mxu0 %v247_v31  ;;  %v648_v43 = vld [vmem:[#allocation8 + $0x24] ss:$8 sps:$4 sm:$0xff]   ;;  %v650_v47 = vld [vmem:[#allocation8 + $0x20] ss:$8 sps:$4 sm:$0xff]   ;;  %v651_v50 = vld [vmem:[#allocation8 + $0x34] ss:$8 sps:$4 sm:$0xff]   ;;  %p740_p0 = pnand %p739_p13, %p733_p10 }
  0x40   :  { %v79_v9 = vxor.u32 %v78_v6, %v75_v3  ;;  %486 = vmatprep.subr.bf16.mxu1 %v645_v35  ;;  %v641_v52 = vld [vmem:[#allocation6 + $0x38] sm:$0xff]   ;;  %v194_v53 = vld [vmem:[#allocation3] sm:$0xff]  ;;  %v654_v59 = vld [vmem:[#allocation8 + $0x44] ss:$8 sps:$4 sm:$0xff]  }
  0x41   :  { %v653_v57 = vld [vmem:[#allocation8 + $0x30] ss:$8 sps:$4 sm:$0xff]   ;;  %v246_v58 = vpack.c.bf16 %v194_v53, %v194_v53  ;;  %v656_v62 = vld [vmem:[#allocation8 + $0x40] ss:$8 sps:$4 sm:$0xff]   ;;  %v657_v63 = vld [vmem:[#allocation8 + $0x54] ss:$8 sps:$4 sm:$0xff]  }
  0x42   :  { %v81_v12 = vshll.u32 %v79_v9, 15  ;;  %v80_v14 = vadd.s32 %v79_v9, %v75_v3  ;;  %v82_v15 = vshrl.u32 %v79_v9, 17  ;;  %599 = vmatpush3.bf16.msra.mxu0 %v631_v17  ;;  %487 = vmatpush1.bf16.msra.mxu1 %v647_v42  ;;  %v659_v6 = vld [vmem:[#allocation8 + $0x50] ss:$8 sps:$4 sm:$0xff]  }
  0x43   :  { %600 = vmatprep.subr.bf16.mxu0 %v632_v18  ;;  %488 = vmatprep.subr.bf16.mxu1 %v648_v43 }
  0x44   :  { %v83_v16 = vor.u32 %v82_v15, %v81_v12 }
  0x46   :  { %v84_v19 = vxor.u32 %v83_v16, %v80_v14  ;;  %601 = vmatpush3.bf16.msra.mxu0 %v633_v21  ;;  %489 = vmatpush1.bf16.msra.mxu1 %v650_v47 }
  0x47   :  { %602 = vmatprep.subr.bf16.mxu0 %v634_v24  ;;  %490 = vmatprep.subr.bf16.mxu1 %v651_v50 }
  0x48   :  { %v86_v20 = vshll.u32 %v84_v19, 26  ;;  %v85_v22 = vadd.s32 %v84_v19, %v80_v14  ;;  %v87_v23 = vshrl.u32 %v84_v19, 6 }
  0x4a   :  { %v88_v25 = vor.u32 %v87_v23, %v86_v20  ;;  %603 = vmatpush3.bf16.msra.mxu0 %v635_v26  ;;  %491 = vmatpush1.bf16.msra.mxu1 %v653_v57 }
  0x4b   :  { %604 = vmatprep.subr.bf16.mxu0 %v636_v28  ;;  %492 = vmatprep.subr.bf16.mxu1 %v654_v59 }
  0x4c   :  { %v89_v27 = vxor.u32 %v88_v25, %v85_v22 }
  0x4e   :  { %v91_v34 = vshll.u32 %v89_v27, 6  ;;  %v90_v36 = vadd.s32 %v89_v27, %v85_v22  ;;  %v92_v37 = vshrl.u32 %v89_v27, 26  ;;  %605 = vmatpush3.bf16.msra.mxu0 %v637_v38  ;;  %493 = vmatpush1.bf16.msra.mxu1 %v656_v62 }
  0x4f   :  { %606 = vmatprep.subr.bf16.mxu0 %v638_v39  ;;  %494 = vmatprep.subr.bf16.mxu1 %v657_v63 }
  0x50   :  { %v93_v41 = vor.u32 %v92_v37, %v91_v34  ;;  %v95_v48 = vadd.s32 %v90_v36, %v873_v1 }
  0x52   :  { %v94_v44 = vxor.u32 %v93_v41, %v90_v36  ;;  %607 = vmatpush3.bf16.msra.mxu0 %v639_v45  ;;  %495 = vmatpush1.bf16.msra.mxu1 %v659_v6 }
  0x53   :  { %608 = vmatprep.subr.bf16.mxu0 %v640_v46 }
  0x54   :  { %v96_v49 = vadd.s32 %v94_v44, %v879_v40 }
  0x56   :  { %v97_v51 = vadd.s32 1, %v96_v49  ;;  %609 = vmatpush3.bf16.msra.mxu0 %v641_v52 }
  0x58   :  { %v98_v54 = vadd.s32 %v97_v51, %v95_v48  ;;  %v99_v55 = vshll.u32 %v97_v51, 17  ;;  %v100_v56 = vshrl.u32 %v97_v51, 15 }
  0x59   :  { %383 = vmatmul.mubr.bf16.vlgmr.msra.gmra.mrb[0].mxu0 %v246_v58 }
  0x5a   :  { %v101_v60 = vor.u32 %v100_v56, %v99_v55 }
  0x5c   :  { %v102_v61 = vxor.u32 %v101_v60, %v98_v54 }
  0x5e   :  { %v103_v2 = vadd.s32 %v102_v61, %v98_v54  ;;  %v104_v3 = vshll.u32 %v102_v61, 29  ;;  %v105_v4 = vshrl.u32 %v102_v61, 3 }
  0x60   :  { %v106_v5 = vor.u32 %v105_v4, %v104_v3 }
  0x62   :  { %v107_v7 = vxor.u32 %v106_v5, %v103_v2 }
  0x64   :  { %v108_v8 = vadd.s32 %v107_v7, %v103_v2  ;;  %v109_v9 = vshll.u32 %v107_v7, 16  ;;  %v110_v10 = vshrl.u32 %v107_v7, 16 }
  0x66   :  { %v111_v11 = vor.u32 %v110_v10, %v109_v9 }
  0x68   :  { %v112_v12 = vxor.u32 %v111_v11, %v108_v8  ;;  %v660_v11 = vld [vmem:[#allocation8 + $0x64] ss:$8 sps:$4 sm:$0xff]  }
  0x69   :  { %496 = vmatprep.subr.bf16.mxu1 %v660_v11 }
  0x6a   :  { %v113_v13 = vadd.s32 %v112_v12, %v108_v8  ;;  %v114_v14 = vshll.u32 %v112_v12, 24  ;;  %v115_v15 = vshrl.u32 %v112_v12, 8  ;;  %v662_v12 = vld [vmem:[#allocation8 + $0x60] ss:$8 sps:$4 sm:$0xff]  }
  0x6b   :  { %497 = vmatpush1.bf16.msra.mxu1 %v662_v12 }
  0x6c   :  { %v116_v16 = vor.u32 %v115_v15, %v114_v14  ;;  %v118_v18 = vadd.s32 %v113_v13, %v879_v40 }
  0x6e   :  { %v117_v17 = vxor.u32 %v116_v16, %v113_v13 }
  0x70   :  { %v119_v19 = vadd.s32 %v117_v17, %v873_v1  ;;  %v663_v17 = vld [vmem:[#allocation8 + $0x74] ss:$8 sps:$4 sm:$0xff]  }
  0x71   :  { %498 = vmatprep.subr.bf16.mxu1 %v663_v17 }
  0x72   :  { %v120_v20 = vadd.s32 2, %v119_v19  ;;  %v665_v19 = vld [vmem:[#allocation8 + $0x70] ss:$8 sps:$4 sm:$0xff]  }
  0x73   :  { %499 = vmatpush1.bf16.msra.mxu1 %v665_v19 }
  0x74   :  { %v121_v21 = vadd.s32 %v120_v20, %v118_v18  ;;  %v122_v22 = vshll.u32 %v120_v20, 13  ;;  %v123_v23 = vshrl.u32 %v120_v20, 19 }
  0x76   :  { %v124_v24 = vor.u32 %v123_v23, %v122_v22 }
  0x78   :  { %v125_v25 = vxor.u32 %v124_v24, %v121_v21  ;;  %v791_v24 = vmov 0  }
  0x79   :  { %516 = vmatprep.mubr.bf16.mxu1 %v791_v24 }
  0x7a   :  { %v126_v26 = vadd.s32 %v125_v25, %v121_v21  ;;  %v127_v27 = vshll.u32 %v125_v25, 15  ;;  %v128_v28 = vshrl.u32 %v125_v25, 17 }
  0x7c   :  { %v129_v29 = vor.u32 %v128_v28, %v127_v27 }
  0x7e   :  { %v130_v30 = vxor.u32 %v129_v29, %v126_v26 }
  0x80   :  { %v131_v31 = vadd.s32 %v130_v30, %v126_v26  ;;  %v132_v32 = vshll.u32 %v130_v30, 26  ;;  %v133_v33 = vshrl.u32 %v130_v30, 6 }
  0x82   :  { %v134_v34 = vor.u32 %v133_v33, %v132_v32 }
  0x84   :  { %v135_v35 = vxor.u32 %v134_v34, %v131_v31 }
  0x86   :  { %v136_v36 = vadd.s32 %v135_v35, %v131_v31  ;;  %v137_v37 = vshll.u32 %v135_v35, 6  ;;  %v138_v38 = vshrl.u32 %v135_v35, 26 }
  0x88   :  { %v139_v39 = vor.u32 %v138_v38, %v137_v37  ;;  %v141_v42 = vadd.s32 %v136_v36, %v873_v1 }
  0x8a   :  { %v140_v41 = vxor.u32 %v139_v39, %v136_v36  ;;  %v558_v36 = vld [vmem:[%s925_s3] ss:$0 sm:$0xff] }
  0x8c   :  { %v142_v43 = vadd.s32 %v140_v41, %v873_v1 }
  0x8e   :  { %v143_v44 = vadd.s32 3, %v142_v43 }
  0x90   :  { %v144_v45 = vadd.s32 %v143_v44, %v141_v42  ;;  %v145_v46 = vshll.u32 %v143_v44, 17  ;;  %v146_v47 = vshrl.u32 %v143_v44, 15 }
  0x92   :  { %v147_v48 = vor.u32 %v146_v47, %v145_v46 }
  0x94   :  { %v148_v49 = vxor.u32 %v147_v48, %v144_v45 }
  0x96   :  { %v149_v50 = vadd.s32 %v148_v49, %v144_v45  ;;  %v150_v51 = vshll.u32 %v148_v49, 29  ;;  %v151_v52 = vshrl.u32 %v148_v49, 3 }
  0x98   :  { %v152_v53 = vor.u32 %v151_v52, %v150_v51 }
  0x9a   :  { %v153_v54 = vxor.u32 %v152_v53, %v149_v50 }
  0x9c   :  { %v154_v55 = vadd.s32 %v153_v54, %v149_v50  ;;  %v155_v56 = vshll.u32 %v153_v54, 16  ;;  %v156_v57 = vshrl.u32 %v153_v54, 16 }
  0x9e   :  { %v157_v58 = vor.u32 %v156_v57, %v155_v56 }
  0xa0   :  { %v158_v59 = vxor.u32 %v157_v58, %v154_v55 }
  0xa2   :  { %v159_v60 = vadd.s32 %v158_v59, %v154_v55  ;;  %v160_v61 = vshll.u32 %v158_v59, 24  ;;  %v161_v62 = vshrl.u32 %v158_v59, 8 }
  0xa4   :  { %v162_v63 = vor.u32 %v161_v62, %v160_v61  ;;  %v164_v3 = vadd.s32 %v159_v60, %v873_v1 }
  0xa6   :  { %v163_v2 = vxor.u32 %v162_v63, %v159_v60 }
  0xa8   :  { %v165_v4 = vadd.s32 %v163_v2, %v879_v40 }
  0xaa   :  { %v166_v5 = vadd.s32 4, %v165_v4 }
  0xac   :  { %v167_v6 = vadd.s32 %v166_v5, %v164_v3  ;;  %v168_v7 = vshll.u32 %v166_v5, 13  ;;  %v169_v8 = vshrl.u32 %v166_v5, 19 }
  0xae   :  { %v170_v9 = vor.u32 %v169_v8, %v168_v7 }
  0xb0   :  { %v171_v10 = vxor.u32 %v170_v9, %v167_v6 }
  0xb2   :  { %v172_v13 = vadd.s32 %v171_v10, %v167_v6  ;;  %v173_v14 = vshll.u32 %v171_v10, 15  ;;  %v174_v15 = vshrl.u32 %v171_v10, 17 }
  0xb4   :  { %v175_v16 = vor.u32 %v174_v15, %v173_v14 }
  0xb6   :  { %v176_v18 = vxor.u32 %v175_v16, %v172_v13 }
  0xb8   :  { %v177_v20 = vadd.s32 %v176_v18, %v172_v13  ;;  %v178_v21 = vshll.u32 %v176_v18, 26  ;;  %v179_v22 = vshrl.u32 %v176_v18, 6 }
  0xba   :  { %v180_v23 = vor.u32 %v179_v22, %v178_v21 }
  0xbc   :  { %v181_v25 = vxor.u32 %v180_v23, %v177_v20 }
  0xbe   :  { %v182_v26 = vadd.s32 %v181_v25, %v177_v20  ;;  %v183_v27 = vshll.u32 %v181_v25, 6  ;;  %v184_v28 = vshrl.u32 %v181_v25, 26 }
  0xc0   :  { %v185_v29 = vor.u32 %v184_v28, %v183_v27  ;;  %v187_v31 = vadd.s32 %v182_v26, %v879_v40 }
  0xc2   :  { %v186_v30 = vxor.u32 %v185_v29, %v182_v26 }
  0xc4   :  { %v188_v32 = vadd.s32 %v186_v30, %v873_v1 }
  0xc6   :  { %v189_v33 = vadd.s32 5, %v188_v32 }
  0xc8   :  { %v190_v34 = vxor.u32 %v189_v33, %v187_v31 }
  0xca   :  { %191 = set.rngseed %v190_v34 }
  0xcb   :  { %v192_v38 = vrng }
  0xcc   :  { %vm193_vm0 = vcmp.ge.u32.totalorder %v192_v38, 858993459 }
  0xcd   :  { %vm591_vm1 = vmpackc.low %vm193_vm0, %vm193_vm0 }
 0x12c   :  { %v610_v35 = vpop.f32.mrb[0].mxu0 }
 0x12d   :  { %v611_v37 = vpop.f32.mrb[1].mxu0 }
 0x12e   :  { %v612_v39 = vadd.f32 %v611_v37, %v610_v35  ;;  %v613_v41 = vpop.f32.mrb[2].mxu0 }
 0x12f   :  { %v614_v42 = vpop.f32.mrb[3].mxu0 }
 0x130   :  { %v385_v43 = vadd.f32 %v612_v39, %v558_v36 }
 0x132   :  { %v390_v44 = vmul.f32 1.25, %v385_v43 }
 0x134   :  { %v391_v40 = vsel %vm193_vm0, %v390_v44, 0.0  ;;  %v592_v45 = vpack.c.bf16 %v390_v44, %v390_v44 }
 0x135   :  { %525 = vst [vmem:[#allocation10] sm:$0xff] %v391_v40 }
 0x136   :  { %593 = vmatmul.mubr.msk.bf16.vlgmr.msra.gmra.mrb[0].mxu1 %vm591_vm1, %v592_v45 }
 0x137   :  { %743 = shalt.err (!%p740_p0)
}
 0x138   :  { %s744_s22 = scalar_lea.hbm %s929_s7, 128 }
 0x139   :  { %p745_p1 = scmp.ne.s32.totalorder %s929_s7, %s744_s22  ;;  %p748_p2 = scmp.lt.u32.totalorder %s744_s22, %s929_s7 }
 0x13b   :  { %p750_p3 = pnand %p748_p2, %p745_p1 }
 0x13d   :  { %753 = shalt.err (!%p750_p3)
}
 0x13e   :  { %547 = dma.vmem_to_hbm [thread:$0]  %s545_s19, 128, %s929_s7, [#allocation11]   ;;  %v395_v1 = vshrl.u32 %v70_v0, 7  ;;  %v245_v47 = vld [vmem:[%s927_s5] sm:$0x3] }
 0x13f   :  { %s793_s30 = smov [#allocation9]  }
 0x140   :  { %v396_v46 = vsub.s32 0, %v395_v1  ;;  %v400_v48 = vsub.s32 1, %v395_v1  ;;  %s534_s8 = sshll.u32 %s793_s30, 4  ;;  %s535_s8 = int_to_ptr.vmem [resolvable:$true] %s534_s8 }
 0x141   :  { %s754_s7 = scalar_lea.vmem %s535_s8, 256  ;;  %p759_p5 = scmp.lt.s32.totalorder %s535_s8, %s535_s8 }
 0x142   :  { %v397_v49 = vrot.slane %v245_v47, %v396_v46  ;;  %v401_v50 = vrot.slane %v245_v47, %v400_v48  ;;  %p755_p4 = scmp.ne.s32.totalorder %s535_s8, %s754_s7  ;;  %p760_p6 = scmp.lt.s32.totalorder %s754_s7, %s754_s7 }
 0x144   :  { %p761_p7 = por %p760_p6, %p759_p5 }
 0x146   :  { %p762_p8 = pnand %p761_p7, %p755_p4 }
 0x209   :  { %v518_v51 = vpop.f32.mrb[0].mxu1 }
 0x20a   :  { %v519_v52 = vadd.f32 %v518_v51, %v397_v49  ;;  %v520_v53 = vpop.f32.mrb[1].mxu1 }
 0x20b   :  { %v521_v54 = vadd.f32 %v520_v53, %v401_v50  ;;  %v522_v55 = vpop.f32.mrb[2].mxu1 }
 0x20c   :  { %526 = vst [vmem:[#allocation9] sm:$0xff] %v519_v52  ;;  %v523_v56 = vpop.f32.mrb[3].mxu1 }
 0x20d   :  { %527 = vst [vmem:[#allocation9 + $0x8] sm:$0xff] %v521_v54 }
 0x20e   :  { %765 = shalt.err (!%p762_p8)
}
 0x20f   :  { %s766_s10 = scalar_lea.hbm %s928_s6, 256 }
 0x210   :  { %p767_p9 = scmp.ne.s32.totalorder %s928_s6, %s766_s10  ;;  %p770_p10 = scmp.lt.u32.totalorder %s766_s10, %s928_s6 }
 0x212   :  { %p772_p11 = pnand %p770_p10, %p767_p9 }
 0x214   :  { %775 = shalt.err (!%p772_p11)
}
 0x215   :  { %537 = dma.vmem_to_hbm [thread:$0]  %s535_s8, 256, %s928_s6, [#allocation5]  }
 0x216   :  { %780 = dma.done.wait [#allocation5], 256  }
 0x217   :  { %781 = vsyncadd [#allocation5], 4294967040 }
 0x218   :  { %782 = dma.done.wait [#allocation11], 128  }
 0x219   :  { %783 = vsyncadd [#allocation11], 4294967168 }
 0x21a   :  { %554 = vsyncpa [#allocation4], 1 }
 0x21b   :  { %555 = vsyncpa [#allocation7], 1 }
 0x21c   :  { %556 = vsyncpa [#allocation5], 1 }
 0x21d   :  { %557 = vsyncpa [#allocation11], 1 }

// kernel: tpu_custom_call.1
= control target key start
LH: loop header
LB: loop body
LE: loop exit
PB: predicated region body
PF: predicated region fallthrough
CT: control target
= control target key end

     0   :  { %13 = vsyncpa [#allocation3], 0  ;;  %s778_s0 = inlined_call_operand.hbm [shape: f32[8,256], index: 0, kind: input, shape index: {}]   ;;  %s779_s1 = inlined_call_operand.hbm [shape: bf16[256,128], index: 1, kind: input, shape index: {}]   ;;  %s780_s2 = inlined_call_operand.vmem [shape: f32[1,128], index: 2, kind: input, shape index: {}]   ;;  %s781_s3 = inlined_call_operand.hbm [shape: bf16[128,256], index: 3, kind: input, shape index: {}]   ;;  %s782_s4 = inlined_call_operand.vmem [shape: f32[1,256], index: 4, kind: input, shape index: {}]   ;;  %s783_s5 = inlined_call_operand.vmem [shape: u32[8,128], index: 5, kind: input, shape index: {}]   ;;  %s784_s6 = inlined_call_operand.hbm [shape: f32[8,256], index: 6, kind: output, shape index: {0}]   ;;  %s785_s7 = inlined_call_operand.hbm [shape: f32[8,128], index: 7, kind: output, shape index: {1}]  }
   0x1   :  { %14 = vsyncpa [#allocation6], 0 }
   0x2   :  { %15 = vsyncpa [#allocation4], 0 }
   0x3   :  { %16 = vsyncpa [#allocation10], 0  ;;  %s659_s24 = smov [#allocation5]   ;;  %s541_s28 = scalar_lea.hbm %s779_s1, 2048 }
   0x4   :  { %s32_s25 = sshll.u32 %s659_s24, 4  ;;  %p542_p0 = scmp.ne.s32.totalorder %s779_s1, %s541_s28  ;;  %s33_s25 = int_to_ptr.vmem [resolvable:$true] %s32_s25 }
   0x5   :  { %p545_p1 = scmp.lt.u32.totalorder %s541_s28, %s779_s1 }
   0x7   :  { %p547_p2 = pnand %p545_p1, %p542_p0 }
   0x9   :  { %550 = shalt.err (!%p547_p2)
}
   0xa   :  { %s551_s10 = scalar_lea.vmem %s33_s25, 2048  ;;  %p556_p4 = scmp.lt.s32.totalorder %s33_s25, %s33_s25 }
   0xb   :  { %p552_p3 = scmp.ne.s32.totalorder %s33_s25, %s551_s10  ;;  %p557_p5 = scmp.lt.s32.totalorder %s551_s10, %s551_s10 }
   0xd   :  { %p558_p6 = por %p557_p5, %p556_p4 }
   0xf   :  { %p559_p7 = pnand %p558_p6, %p552_p3 }
  0x11   :  { %562 = shalt.err (!%p559_p7)
}
  0x12   :  { %s660_s11 = smov 64   ;;  %s661_s12 = smov 4  }
  0x13   :  { %38 = dma.hbm_to_vmem [thread:$0]  %s779_s1, 2048, %s33_s25, [#allocation6], %s660_s11, %s660_s11, %s661_s12  }
  0x14   :  { %s662_s15 = smov [#allocation2]   ;;  %s663_s17 = smov [#allocation7]  }
  0x15   :  { %s23_s16 = sshll.u32 %s662_s15, 4  ;;  %s46_s18 = sshll.u32 %s663_s17, 4  ;;  %s24_s16 = int_to_ptr.vmem [resolvable:$true] %s23_s16  ;;  %s47_s18 = int_to_ptr.vmem [resolvable:$true] %s46_s18 }
  0x16   :  { %s563_s21 = scalar_lea.hbm %s778_s0, 256 }
  0x17   :  { %p564_p8 = scmp.ne.s32.totalorder %s778_s0, %s563_s21  ;;  %p567_p9 = scmp.lt.u32.totalorder %s563_s21, %s778_s0 }
  0x19   :  { %p569_p10 = pnand %p567_p9, %p564_p8 }
  0x1b   :  { %572 = shalt.err (!%p569_p10)
}
  0x1c   :  { %s573_s1 = scalar_lea.vmem %s24_s16, 256  ;;  %p578_p12 = scmp.lt.s32.totalorder %s24_s16, %s24_s16 }
  0x1d   :  { %p574_p11 = scmp.ne.s32.totalorder %s24_s16, %s573_s1  ;;  %p579_p13 = scmp.lt.s32.totalorder %s573_s1, %s573_s1 }
  0x1f   :  { %p580_p0 = por %p579_p13, %p578_p12 }
  0x21   :  { %p581_p1 = pnand %p580_p0, %p574_p11 }
  0x23   :  { %584 = shalt.err (!%p581_p1)
}
  0x24   :  { %26 = dma.hbm_to_vmem [thread:$0]  %s778_s0, 256, %s24_s16, [#allocation3]  }
  0x25   :  { %s585_s30 = scalar_lea.hbm %s781_s3, 2048 }
  0x26   :  { %p586_p2 = scmp.ne.s32.totalorder %s781_s3, %s585_s30  ;;  %p589_p3 = scmp.lt.u32.totalorder %s585_s30, %s781_s3 }
  0x28   :  { %p591_p4 = pnand %p589_p3, %p586_p2 }
  0x2a   :  { %594 = shalt.err (!%p591_p4)
}
  0x2b   :  { %s595_s12 = scalar_lea.vmem %s47_s18, 2048  ;;  %p600_p6 = scmp.lt.s32.totalorder %s47_s18, %s47_s18 }
  0x2c   :  { %p596_p5 = scmp.ne.s32.totalorder %s47_s18, %s595_s12  ;;  %p601_p7 = scmp.lt.s32.totalorder %s595_s12, %s595_s12 }
  0x2e   :  { %p602_p8 = por %p601_p7, %p600_p6 }
  0x30   :  { %p603_p9 = pnand %p602_p8, %p596_p5 }
  0x32   :  { %606 = shalt.err (!%p603_p9)
}
  0x33   :  { %s664_s0 = smov 128   ;;  %s665_s13 = smov 8  }
  0x34   :  { %52 = dma.hbm_to_vmem [thread:$0]  %s781_s3, 2048, %s47_s18, [#allocation6], %s664_s0, %s664_s0, %s665_s13  }
  0x35   :  { %651 = dma.done.wait [#allocation3], 256  }
  0x36   :  { %652 = vsyncadd [#allocation3], 4294967040 }
  0x37   :  { %653 = dma.done.wait [#allocation6], 4096  }
  0x38   :  { %654 = vsyncadd [#allocation6], 4294963200  ;;  %v501_v0 = vld [vmem:[#allocation5 + $0x40] sm:$0xff]   ;;  %v503_v2 = vld [vmem:[#allocation5 + $0x48] sm:$0xff]   ;;  %v666_v36 = vmov 0   ;;  %s667_s19 = smov [#allocation9]  }
  0x39   :  { %v502_v1 = vld [vmem:[#allocation5] sm:$0xff]   ;;  %469 = vmatprep.subr.bf16.mxu0 %v501_v0  ;;  %v504_v3 = vld [vmem:[#allocation5 + $0x8] sm:$0xff]   ;;  %v505_v4 = vld [vmem:[#allocation5 + $0x50] sm:$0xff]   ;;  %391 = vmatprep.mubr.bf16.mxu1 %v666_v36  ;;  %s419_s20 = sshll.u32 %s667_s19, 4  ;;  %s420_s20 = int_to_ptr.vmem [resolvable:$true] %s419_s20 }
  0x3a   :  { %470 = vmatpush3.bf16.msra.mxu0 %v502_v1  ;;  %v506_v5 = vld [vmem:[#allocation5 + $0x10] sm:$0xff]   ;;  %v507_v6 = vld [vmem:[#allocation5 + $0x58] sm:$0xff]   ;;  %v509_v8 = vld [vmem:[#allocation5 + $0x60] sm:$0xff]   ;;  %p612_p11 = scmp.lt.s32.totalorder %s420_s20, %s420_s20 }
  0x3b   :  { %471 = vmatprep.subr.bf16.mxu0 %v503_v2  ;;  %v508_v7 = vld [vmem:[#allocation5 + $0x18] sm:$0xff]   ;;  %v510_v9 = vld [vmem:[#allocation5 + $0x20] sm:$0xff]   ;;  %v511_v10 = vld [vmem:[#allocation5 + $0x68] sm:$0xff]  }
  0x3c   :  { %v70_v11 = vld [vmem:[#allocation2 + $0x8] sm:$0xff]  ;;  %v517_v13 = vld [vmem:[#allocation7 + $0x4] ss:$8 sps:$4 sm:$0xff]   ;;  %v519_v14 = vld [vmem:[#allocation7] ss:$8 sps:$4 sm:$0xff]  }
  0x3d   :  { %v122_v12 = vpack.c.bf16 %v70_v11, %v70_v11  ;;  %v520_v15 = vld [vmem:[#allocation7 + $0x14] ss:$8 sps:$4 sm:$0xff]   ;;  %v512_v16 = vld [vmem:[#allocation5 + $0x28] sm:$0xff]   ;;  %359 = vmatprep.subr.bf16.mxu1 %v517_v13  ;;  %v522_v18 = vld [vmem:[#allocation7 + $0x10] ss:$8 sps:$4 sm:$0xff]  }
  0x3e   :  { %472 = vmatpush3.bf16.msra.mxu0 %v504_v3  ;;  %v513_v17 = vld [vmem:[#allocation5 + $0x70] sm:$0xff]   ;;  %360 = vmatpush1.bf16.msra.mxu1 %v519_v14  ;;  %v523_v19 = vld [vmem:[#allocation7 + $0x24] ss:$8 sps:$4 sm:$0xff]   ;;  %v515_v21 = vld [vmem:[#allocation5 + $0x78] sm:$0xff]  }
  0x3f   :  { %473 = vmatprep.subr.bf16.mxu0 %v505_v4  ;;  %257 = vmatprep.mubr.bf16.mxu0 %v122_v12  ;;  %v514_v20 = vld [vmem:[#allocation5 + $0x30] sm:$0xff]   ;;  %v525_v22 = vld [vmem:[#allocation7 + $0x20] ss:$8 sps:$4 sm:$0xff]   ;;  %v516_v24 = vld [vmem:[#allocation5 + $0x38] sm:$0xff]  }
  0x40   :  { %361 = vmatprep.subr.bf16.mxu1 %v520_v15  ;;  %v526_v23 = vld [vmem:[#allocation7 + $0x34] ss:$8 sps:$4 sm:$0xff]   ;;  %v528_v26 = vld [vmem:[#allocation7 + $0x30] ss:$8 sps:$4 sm:$0xff]   ;;  %v529_v28 = vld [vmem:[#allocation7 + $0x44] ss:$8 sps:$4 sm:$0xff]  }
  0x41   :  { %v69_v25 = vld [vmem:[#allocation2] sm:$0xff]  ;;  %v531_v29 = vld [vmem:[#allocation7 + $0x40] ss:$8 sps:$4 sm:$0xff]   ;;  %v535_v32 = vld [vmem:[#allocation7 + $0x64] ss:$8 sps:$4 sm:$0xff]  }
  0x42   :  { %474 = vmatpush3.bf16.msra.mxu0 %v506_v5  ;;  %362 = vmatpush1.bf16.msra.mxu1 %v522_v18  ;;  %v121_v27 = vpack.c.bf16 %v69_v25, %v69_v25  ;;  %v532_v30 = vld [vmem:[#allocation7 + $0x54] ss:$8 sps:$4 sm:$0xff]   ;;  %v534_v31 = vld [vmem:[#allocation7 + $0x50] ss:$8 sps:$4 sm:$0xff]   ;;  %v537_v33 = vld [vmem:[#allocation7 + $0x60] ss:$8 sps:$4 sm:$0xff]  }
  0x43   :  { %475 = vmatprep.subr.bf16.mxu0 %v507_v6  ;;  %363 = vmatprep.subr.bf16.mxu1 %v523_v19  ;;  %v538_v34 = vld [vmem:[#allocation7 + $0x74] ss:$8 sps:$4 sm:$0xff]   ;;  %v540_v35 = vld [vmem:[#allocation7 + $0x70] ss:$8 sps:$4 sm:$0xff]  }
  0x44   :  { %v433_v38 = vld [vmem:[%s780_s2] ss:$0 sm:$0xff]  ;;  %s607_s2 = scalar_lea.vmem %s420_s20, 128 }
  0x45   :  { %v67_v40 = vld [vmem:[%s783_s5] sm:$0xff]  ;;  %p608_p10 = scmp.ne.s32.totalorder %s420_s20, %s607_s2  ;;  %p613_p12 = scmp.lt.s32.totalorder %s607_s2, %s607_s2 }
  0x46   :  { %476 = vmatpush3.bf16.msra.mxu0 %v508_v7  ;;  %364 = vmatpush1.bf16.msra.mxu1 %v525_v22  ;;  %vm68_vm0 = vcmp.ge.u32.totalorder %v67_v40, 858993459 }
  0x47   :  { %477 = vmatprep.subr.bf16.mxu0 %v509_v8  ;;  %365 = vmatprep.subr.bf16.mxu1 %v526_v23  ;;  %vm466_vm1 = vmpackc.low %vm68_vm0, %vm68_vm0  ;;  %p614_p13 = por %p613_p12, %p612_p11 }
  0x49   :  { %p615_p0 = pnand %p614_p13, %p608_p10 }
  0x4a   :  { %478 = vmatpush3.bf16.msra.mxu0 %v510_v9  ;;  %366 = vmatpush1.bf16.msra.mxu1 %v528_v26 }
  0x4b   :  { %479 = vmatprep.subr.bf16.mxu0 %v511_v10  ;;  %367 = vmatprep.subr.bf16.mxu1 %v529_v28 }
  0x4e   :  { %480 = vmatpush3.bf16.msra.mxu0 %v512_v16  ;;  %368 = vmatpush1.bf16.msra.mxu1 %v531_v29 }
  0x4f   :  { %481 = vmatprep.subr.bf16.mxu0 %v513_v17  ;;  %369 = vmatprep.subr.bf16.mxu1 %v532_v30 }
  0x52   :  { %482 = vmatpush3.bf16.msra.mxu0 %v514_v20  ;;  %370 = vmatpush1.bf16.msra.mxu1 %v534_v31 }
  0x53   :  { %483 = vmatprep.subr.bf16.mxu0 %v515_v21  ;;  %371 = vmatprep.subr.bf16.mxu1 %v535_v32 }
  0x56   :  { %484 = vmatpush3.bf16.msra.mxu0 %v516_v24  ;;  %372 = vmatpush1.bf16.msra.mxu1 %v537_v33 }
  0x57   :  { %373 = vmatprep.subr.bf16.mxu1 %v538_v34 }
  0x59   :  { %258 = vmatmul.mubr.bf16.vlgmr.msra.gmra.mrb[0].mxu0 %v121_v27 }
  0x5a   :  { %374 = vmatpush1.bf16.msra.mxu1 %v540_v35 }
 0x12c   :  { %v485_v37 = vpop.f32.mrb[0].mxu0 }
 0x12d   :  { %v486_v39 = vpop.f32.mrb[1].mxu0 }
 0x12e   :  { %v487_v41 = vadd.f32 %v486_v39, %v485_v37  ;;  %v488_v42 = vpop.f32.mrb[2].mxu0 }
 0x12f   :  { %v489_v43 = vpop.f32.mrb[3].mxu0 }
 0x130   :  { %v260_v44 = vadd.f32 %v487_v41, %v433_v38 }
 0x132   :  { %v265_v45 = vmul.f32 1.25, %v260_v44 }
 0x134   :  { %v467_v46 = vpack.c.bf16 %v265_v45, %v265_v45  ;;  %v266_v47 = vsel %vm68_vm0, %v265_v45, 0.0 }
 0x135   :  { %400 = vst [vmem:[#allocation9] sm:$0xff] %v266_v47 }
 0x136   :  { %468 = vmatmul.mubr.msk.bf16.vlgmr.msra.gmra.mrb[0].mxu1 %vm466_vm1, %v467_v46 }
 0x137   :  { %618 = shalt.err (!%p615_p0)
}
 0x138   :  { %s619_s22 = scalar_lea.hbm %s785_s7, 128 }
 0x139   :  { %p620_p1 = scmp.ne.s32.totalorder %s785_s7, %s619_s22  ;;  %p623_p2 = scmp.lt.u32.totalorder %s619_s22, %s785_s7 }
 0x13b   :  { %p625_p3 = pnand %p623_p2, %p620_p1 }
 0x13d   :  { %628 = shalt.err (!%p625_p3)
}
 0x13e   :  { %422 = dma.vmem_to_hbm [thread:$0]  %s420_s20, 128, %s785_s7, [#allocation10]   ;;  %v269_v48 = vlaneseq  ;;  %v120_v51 = vld [vmem:[%s782_s4] sm:$0x3] }
 0x13f   :  { %s668_s30 = smov [#allocation8]  }
 0x140   :  { %v270_v49 = vshrl.u32 %v269_v48, 7  ;;  %s409_s8 = sshll.u32 %s668_s30, 4  ;;  %s410_s8 = int_to_ptr.vmem [resolvable:$true] %s409_s8 }
 0x141   :  { %s629_s7 = scalar_lea.vmem %s410_s8, 256  ;;  %p634_p5 = scmp.lt.s32.totalorder %s410_s8, %s410_s8 }
 0x142   :  { %v271_v50 = vsub.s32 0, %v270_v49  ;;  %v275_v52 = vsub.s32 1, %v270_v49  ;;  %p630_p4 = scmp.ne.s32.totalorder %s410_s8, %s629_s7  ;;  %p635_p6 = scmp.lt.s32.totalorder %s629_s7, %s629_s7 }
 0x144   :  { %v272_v53 = vrot.slane %v120_v51, %v271_v50  ;;  %v276_v54 = vrot.slane %v120_v51, %v275_v52  ;;  %p636_p7 = por %p635_p6, %p634_p5 }
 0x146   :  { %p637_p8 = pnand %p636_p7, %p630_p4 }
 0x209   :  { %v393_v55 = vpop.f32.mrb[0].mxu1 }
 0x20a   :  { %v394_v56 = vadd.f32 %v393_v55, %v272_v53  ;;  %v395_v57 = vpop.f32.mrb[1].mxu1 }
 0x20b   :  { %v396_v58 = vadd.f32 %v395_v57, %v276_v54  ;;  %v397_v59 = vpop.f32.mrb[2].mxu1 }
 0x20c   :  { %401 = vst [vmem:[#allocation8] sm:$0xff] %v394_v56  ;;  %v398_v60 = vpop.f32.mrb[3].mxu1 }
 0x20d   :  { %402 = vst [vmem:[#allocation8 + $0x8] sm:$0xff] %v396_v58 }
 0x20e   :  { %640 = shalt.err (!%p637_p8)
}
 0x20f   :  { %s641_s10 = scalar_lea.hbm %s784_s6, 256 }
 0x210   :  { %p642_p9 = scmp.ne.s32.totalorder %s784_s6, %s641_s10  ;;  %p645_p10 = scmp.lt.u32.totalorder %s641_s10, %s784_s6 }
 0x212   :  { %p647_p11 = pnand %p645_p10, %p642_p9 }
 0x214   :  { %650 = shalt.err (!%p647_p11)
}
 0x215   :  { %412 = dma.vmem_to_hbm [thread:$0]  %s410_s8, 256, %s784_s6, [#allocation4]  }
 0x216   :  { %655 = dma.done.wait [#allocation4], 256  }
 0x217   :  { %656 = vsyncadd [#allocation4], 4294967040 }
 0x218   :  { %657 = dma.done.wait [#allocation10], 128  }
 0x219   :  { %658 = vsyncadd [#allocation10], 4294967168 }
 0x21a   :  { %429 = vsyncpa [#allocation3], 1 }
 0x21b   :  { %430 = vsyncpa [#allocation6], 1 }
 0x21c   :  { %431 = vsyncpa [#allocation4], 1 }
 0x21d   :  { %432 = vsyncpa [#allocation10], 1 }

</bundles_post_ra>
